<compile_context>
chip_gen: v7x
topology: tpu7x:2x2x1
jax: 0.10.0
libtpu: 0.0.40
codegen_flags: <defaults>
</compile_context>

<pallas_src>
import functools

import jax
import jax.numpy as jnp
from jax import lax
from jax.experimental import pallas as pl
from jax.experimental.pallas import tpu as pltpu


# ------------------------------ small helpers ------------------------------

def _round_up(v, m):
    return (v + m - 1) // m * m


def _pad2d(a, rows, cols):
    return jnp.zeros((rows, cols), a.dtype).at[:a.shape[0], :a.shape[1]].set(a)


def _pick_tile(n_pad, pref=512):
    for t in (pref, 512, 256, 128):
        if t <= n_pad and n_pad % t == 0:
            return t
    return 128


def _vmem_limit(block_bytes, scratch_bytes):
    # Double-buffer every streamed block (upper bound), add scratch + headroom.
    # Cap well under v7x's 64 MiB physical VMEM per TensorCore.
    est = 2 * block_bytes + scratch_bytes
    return int(min(48 * 1024 * 1024, max(16 * 1024 * 1024, 3 * est)))


# --------------------------- shared kernel pieces ---------------------------

def _aggregate_step(col_ids_ref, ncols_ref, a_ref, x_ref, acc_ref, *, tk):
    """One (row-tile, sparse-column-tile) aggregation step: acc += A_ik @ x_k."""
    i = pl.program_id(0)
    k = pl.program_id(1)

    @pl.when(k == 0)
    def _():
        acc_ref[...] = jnp.zeros_like(acc_ref)

    # Only the first ncols[i] k-steps carry a non-empty adjacency tile; the
    # remaining steps re-visit the same block (DMA skipped) and compute nothing.
    @pl.when(k < ncols_ref[i])
    def _():
        col = col_ids_ref[i, k]
        start = pl.multiple_of(col * tk, tk)
        xk = x_ref[pl.ds(start, tk), :]          # slice of the VMEM-resident x
        acc_ref[...] += jnp.dot(a_ref[...], xk,
                                preferred_element_type=jnp.float32)


def _conv_mlp(acc_f32, w1_ref, b1_ref, w2_ref, b2_ref):
    """Lin1 + BatchNorm(eval, folded) + ReLU, then Lin2, then conv(..).relu()."""
    # NOTE: the aggregated sum is down-cast to bf16 for the MXU; acceptable for
    # inference (documented precision caveat).
    h = acc_f32.astype(jnp.bfloat16)
    h1 = jnp.dot(h, w1_ref[...], preferred_element_type=jnp.float32)
    h1 = jnp.maximum(h1 + b1_ref[...], 0.0)              # f32 epilogue (v5e-safe)
    h2 = jnp.dot(h1.astype(jnp.bfloat16), w2_ref[...],
                 preferred_element_type=jnp.float32)
    return jnp.maximum(h2 + b2_ref[...], 0.0)


# --------------------------- fused GINConv kernel ---------------------------

def _gin_layer_kernel(col_ids_ref, ncols_ref, a_ref, x_ref,
                      w1_ref, b1_ref, w2_ref, b2_ref, o_ref, acc_ref, *, tk):
    _aggregate_step(col_ids_ref, ncols_ref, a_ref, x_ref, acc_ref, tk=tk)

    @pl.when(pl.program_id(1) == pl.num_programs(1) - 1)
    def _():
        o_ref[...] = _conv_mlp(acc_ref[...], w1_ref, b1_ref,
                               w2_ref, b2_ref).astype(o_ref.dtype)


def gin_layer(col_ids, ncols, agg_op, x, w1, b1, w2, b2, *, tm, tk):
    n_pad = agg_op.shape[0]
    c_pad = x.shape[1]
    h_pad = w1.shape[1]
    grid = (n_pad // tm, n_pad // tk)

    flops = (2 * n_pad * n_pad * c_pad
             + 2 * n_pad * (c_pad * h_pad + h_pad * h_pad))
    # Worst-case dense A traffic + x once (VMEM-resident) + weights + output.
    bytes_accessed = (n_pad * n_pad * 2 + n_pad * c_pad * 2
                      + (c_pad * h_pad + h_pad * h_pad) * 2 + 2 * h_pad * 4
                      + n_pad * h_pad * 2)

    block_bytes = (tm * tk * 2 + n_pad * c_pad * 2
                   + (c_pad * h_pad + h_pad * h_pad) * 2 + 2 * h_pad * 4
                   + tm * h_pad * 2)
    scratch_bytes = tm * c_pad * 4

    return pl.pallas_call(
        functools.partial(_gin_layer_kernel, tk=tk),
        out_shape=jax.ShapeDtypeStruct((n_pad, h_pad), jnp.bfloat16),
        grid_spec=pltpu.PrefetchScalarGridSpec(
            num_scalar_prefetch=2,
            grid=grid,
            in_specs=[
                # A tile: data-dependent column tile (block-sparse walk).
                pl.BlockSpec((tm, tk), lambda i, k, cid, ncl: (i, cid[i, k])),
                # x: fully VMEM-resident, fetched once (constant index).
                pl.BlockSpec((n_pad, c_pad), lambda i, k, cid, ncl: (0, 0)),
                pl.BlockSpec((c_pad, h_pad), lambda i, k, cid, ncl: (0, 0)),  # W1
                pl.BlockSpec((1, h_pad), lambda i, k, cid, ncl: (0, 0)),      # b1
                pl.BlockSpec((h_pad, h_pad), lambda i, k, cid, ncl: (0, 0)),  # W2
                pl.BlockSpec((1, h_pad), lambda i, k, cid, ncl: (0, 0)),      # b2
            ],
            out_specs=pl.BlockSpec((tm, h_pad), lambda i, k, cid, ncl: (i, 0)),
            scratch_shapes=[pltpu.VMEM((tm, c_pad), jnp.float32)],
        ),
        compiler_params=pltpu.CompilerParams(
            dimension_semantics=("parallel", "arbitrary"),
            vmem_limit_bytes=_vmem_limit(block_bytes, scratch_bytes)),
        cost_estimate=pl.CostEstimate(flops=int(flops), transcendentals=0,
                                      bytes_accessed=int(bytes_accessed)),
    )(col_ids, ncols, agg_op, x, w1, b1, w2, b2)


# ------------- last GINConv layer fused with pooling + final MLP -------------

def _gin_last_kernel(col_ids_ref, ncols_ref, a_ref, x_ref, batch_ref,
                     w1_ref, b1_ref, w2_ref, b2_ref,
                     w3_ref, b3_ref, w4_ref, b4_ref,
                     o_ref, acc_ref, pool_ref, *, tk):
    i = pl.program_id(0)
    k = pl.program_id(1)
    nk = pl.num_programs(1)

    @pl.when((i == 0) & (k == 0))
    def _():
        pool_ref[...] = jnp.zeros_like(pool_ref)

    _aggregate_step(col_ids_ref, ncols_ref, a_ref, x_ref, acc_ref, tk=tk)

    @pl.when(k == nk - 1)
    def _():
        h2 = _conv_mlp(acc_ref[...], w1_ref, b1_ref, w2_ref, b2_ref)
        g_pad = pool_ref.shape[0]
        tm = h2.shape[0]
        # onehot_t[g, n] = 1 if batch[n] == g  (padded nodes carry id -1 -> 0)
        gids = lax.broadcasted_iota(jnp.int32, (g_pad, tm), 0)
        onehot_t = (batch_ref[...] == gids).astype(jnp.bfloat16)
        pool_ref[...] += jnp.dot(onehot_t, h2.astype(jnp.bfloat16),
                                 preferred_element_type=jnp.float32)

    @pl.when((k == nk - 1) & (i == pl.num_programs(0) - 1))
    def _():
        p = pool_ref[...].astype(jnp.bfloat16)
        h3 = jnp.dot(p, w3_ref[...], preferred_element_type=jnp.float32)
        h3 = jnp.maximum(h3 + b3_ref[...], 0.0)
        # TODO(synk): dropout(p=0.5) is identity in eval mode; training-mode
        # dropout would mask with pltpu.prng_random_bits here.
        out = jnp.dot(h3.astype(jnp.bfloat16), w4_ref[...],
                      preferred_element_type=jnp.float32) + b4_ref[...]
        o_ref[...] = out.astype(o_ref.dtype)


def gin_last_layer(col_ids, ncols, agg_op, x, batch_row,
                   w1, b1, w2, b2, w3, b3, w4, b4, *, tm, tk, g_pad):
    n_pad = agg_op.shape[0]
    c_pad = x.shape[1]
    h_pad = w1.shape[1]
    o_pad = w4.shape[1]
    grid = (n_pad // tm, n_pad // tk)

    flops = (2 * n_pad * n_pad * c_pad
             + 2 * n_pad * (c_pad * h_pad + h_pad * h_pad)
             + 2 * n_pad * g_pad * h_pad
             + 2 * g_pad * (h_pad * h_pad + h_pad * o_pad))
    bytes_accessed = (n_pad * n_pad * 2 + n_pad * c_pad * 2 + n_pad * 4
                      + (c_pad * h_pad + 2 * h_pad * h_pad + h_pad * o_pad) * 2
                      + 4 * h_pad * 4 + g_pad * o_pad * 4)

    block_bytes = (tm * tk * 2 + n_pad * c_pad * 2 + tm * 4
                   + (c_pad * h_pad + 2 * h_pad * h_pad + h_pad * o_pad) * 2
                   + 4 * h_pad * 4 + g_pad * o_pad * 4)
    scratch_bytes = tm * c_pad * 4 + g_pad * h_pad * 4

    return pl.pallas_call(
        functools.partial(_gin_last_kernel, tk=tk),
        out_shape=jax.ShapeDtypeStruct((g_pad, o_pad), jnp.float32),
        grid_spec=pltpu.PrefetchScalarGridSpec(
            num_scalar_prefetch=2,
            grid=grid,
            in_specs=[
                pl.BlockSpec((tm, tk), lambda i, k, cid, ncl: (i, cid[i, k])),
                pl.BlockSpec((n_pad, c_pad), lambda i, k, cid, ncl: (0, 0)),
                pl.BlockSpec((1, tm), lambda i, k, cid, ncl: (0, i)),   # batch ids
                pl.BlockSpec((c_pad, h_pad), lambda i, k, cid, ncl: (0, 0)),  # W1
                pl.BlockSpec((1, h_pad), lambda i, k, cid, ncl: (0, 0)),      # b1
                pl.BlockSpec((h_pad, h_pad), lambda i, k, cid, ncl: (0, 0)),  # W2
                pl.BlockSpec((1, h_pad), lambda i, k, cid, ncl: (0, 0)),      # b2
                pl.BlockSpec((h_pad, h_pad), lambda i, k, cid, ncl: (0, 0)),  # W3
                pl.BlockSpec((1, h_pad), lambda i, k, cid, ncl: (0, 0)),      # b3
                pl.BlockSpec((h_pad, o_pad), lambda i, k, cid, ncl: (0, 0)),  # W4
                pl.BlockSpec((1, o_pad), lambda i, k, cid, ncl: (0, 0)),      # b4
            ],
            out_specs=pl.BlockSpec((g_pad, o_pad), lambda i, k, cid, ncl: (0, 0)),
            scratch_shapes=[pltpu.VMEM((tm, c_pad), jnp.float32),
                            pltpu.VMEM((g_pad, h_pad), jnp.float32)],
        ),
        compiler_params=pltpu.CompilerParams(
            # Row axis feeds the cross-tile pool accumulator -> sequential.
            dimension_semantics=("arbitrary", "arbitrary"),
            vmem_limit_bytes=_vmem_limit(block_bytes, scratch_bytes)),
        cost_estimate=pl.CostEstimate(flops=int(flops), transcendentals=0,
                                      bytes_accessed=int(bytes_accessed)),
    )(col_ids, ncols, agg_op, x, batch_row,
      w1, b1, w2, b2, w3, b3, w4, b4)


# ------------------------------- GIN model ---------------------------------

def init_gin_params(key, in_channels, hidden_channels, out_channels, num_layers):
    """Synthetic params mirroring the PyTorch module, padded to lane-dense
    (multiple-of-128) channel dims; BN (eval) folded into Linear1; weights bf16,
    biases f32."""
    h_pad = _round_up(hidden_channels, 128)
    o_pad = _round_up(out_channels, 128)
    bn_eps = 1e-5
    params = {"convs": []}
    c_in = in_channels
    for _ in range(num_layers):
        c_pad = _round_up(c_in, 128)
        key, k1, k2, k3, k4 = jax.random.split(key, 5)
        w1 = jax.random.normal(k1, (c_in, hidden_channels), jnp.float32) * 0.1
        b1 = jax.random.normal(k2, (hidden_channels,), jnp.float32) * 0.1
        w2 = jax.random.normal(k3, (hidden_channels, hidden_channels), jnp.float32) * 0.1
        b2 = jax.random.normal(k4, (hidden_channels,), jnp.float32) * 0.1
        # BatchNorm1d eval mode (gamma=1, beta=0, mean=0, var=1) folded into Lin1.
        gamma = jnp.ones((hidden_channels,), jnp.float32)
        beta = jnp.zeros((hidden_channels,), jnp.float32)
        r_mean = jnp.zeros((hidden_channels,), jnp.float32)
        r_var = jnp.ones((hidden_channels,), jnp.float32)
        scale = gamma / jnp.sqrt(r_var + bn_eps)
        w1f = w1 * scale[None, :]
        b1f = (b1 - r_mean) * scale + beta
        params["convs"].append({
            "w1": _pad2d(w1f, c_pad, h_pad).astype(jnp.bfloat16),
            "b1": _pad2d(b1f[None, :], 1, h_pad),
            "w2": _pad2d(w2, h_pad, h_pad).astype(jnp.bfloat16),
            "b2": _pad2d(b2[None, :], 1, h_pad),
        })
        c_in = hidden_channels
    key, k5, k6, k7, k8 = jax.random.split(key, 5)
    w3 = jax.random.normal(k5, (hidden_channels, hidden_channels), jnp.float32) * 0.1
    b3 = jax.random.normal(k6, (hidden_channels,), jnp.float32) * 0.1
    w4 = jax.random.normal(k7, (hidden_channels, out_channels), jnp.float32) * 0.1
    b4 = jax.random.normal(k8, (out_channels,), jnp.float32) * 0.1
    params["mlp"] = {
        "w1": _pad2d(w3, h_pad, h_pad).astype(jnp.bfloat16),
        "b1": _pad2d(b3[None, :], 1, h_pad),
        "w2": _pad2d(w4, h_pad, o_pad).astype(jnp.bfloat16),
        "b2": _pad2d(b4[None, :], 1, o_pad),
    }
    return params


def gin_forward(params, x, edge_index, batch, *, num_graphs, out_channels,
                eps=0.0, tile=512):
    """x: [N, C] float, edge_index: [2, E] int32 (src, dst), batch: [N] int32."""
    n, c_in = x.shape
    n_pad = _round_up(n, 128)          # minimal lane-dense padding (not tile-sized)
    c_pad = _round_up(c_in, 128)
    tm = _pick_tile(n_pad, tile)
    tk = _pick_tile(n_pad, tile)
    nrt, nkt = n_pad // tm, n_pad // tk

    src, dst = edge_index[0], edge_index[1]
    # Padded dense aggregation operator A + (1+eps)I built directly in bf16
    # (entries are small per-edge multiplicities; neighbor sums accumulate in
    # f32 inside the kernel, so no f32 N^2 intermediate is needed).
    adj = jnp.zeros((n_pad, n_pad), jnp.bfloat16)
    adj = adj.at[dst, src].add(jnp.ones_like(src, dtype=jnp.bfloat16))
    node_idx = jnp.arange(n_pad, dtype=jnp.int32)
    self_w = jnp.where(node_idx < n, 1.0 + eps, 0.0).astype(jnp.bfloat16)
    agg_op = adj.at[node_idx, node_idx].add(self_w)

    # Block-sparsity metadata computed from the edge list (never from dense A):
    # per row tile, the compacted list of non-empty adjacency column tiles,
    # padded by repeating the last valid index (revisited block -> DMA skipped).
    mask = jnp.zeros((nrt, nkt), jnp.bool_)
    mask = mask.at[dst // tm, src // tk].set(True)
    real = jnp.arange(n, dtype=jnp.int32)
    mask = mask.at[real // tm, real // tk].set(True)      # self-loop diag blocks
    ncols = jnp.maximum(mask.sum(axis=1), 1).astype(jnp.int32)          # (nrt,)
    order = jnp.argsort(jnp.logical_not(mask).astype(jnp.int32),
                        axis=1).astype(jnp.int32)                       # (nrt, nkt)
    last_valid = jnp.take_along_axis(order, (ncols - 1)[:, None], axis=1)
    kk = jnp.arange(nkt, dtype=jnp.int32)[None, :]
    col_ids = jnp.where(kk < ncols[:, None], order, last_valid).astype(jnp.int32)

    h = jnp.zeros((n_pad, c_pad), jnp.bfloat16).at[:n, :c_in].set(
        x.astype(jnp.bfloat16))

    convs = params["convs"]
    for layer in convs[:-1]:
        h = gin_layer(col_ids, ncols, agg_op, h, layer["w1"], layer["b1"],
                      layer["w2"], layer["b2"], tm=tm, tk=tk)

    # Last GINConv fused with global_add_pool + final MLP; padded nodes get
    # graph id -1 (masked out of the pool).
    g_pad = _round_up(max(num_graphs, 8), 8)
    batch_row = jnp.full((1, n_pad), -1, jnp.int32).at[0, :n].set(
        batch.astype(jnp.int32))
    last = convs[-1]
    out_pad = gin_last_layer(col_ids, ncols, agg_op, h, batch_row,
                             last["w1"], last["b1"], last["w2"], last["b2"],
                             params["mlp"]["w1"], params["mlp"]["b1"],
                             params["mlp"]["w2"], params["mlp"]["b2"],
                             tm=tm, tk=tk, g_pad=g_pad)
    return out_pad[:num_graphs, :out_channels]


# --------------------------------- driver ----------------------------------

if __name__ == "__main__":
    key = jax.random.PRNGKey(0)

    num_nodes = 12
    in_channels = 4
    hidden_channels = 32
    out_channels = 3
    num_layers = 2
    num_graphs = 2
    num_edges = 20

    key, kx, ke = jax.random.split(key, 3)
    x = jax.random.normal(kx, (num_nodes, in_channels), jnp.float32)

    # Random directed edges (src -> dst), made bidirectional like typical graphs.
    e = jax.random.randint(ke, (2, num_edges), 0, num_nodes, dtype=jnp.int32)
    edge_index = jnp.concatenate([e, e[::-1]], axis=1)        # [2, 2*E]

    # First 6 nodes belong to graph 0, last 6 to graph 1.
    batch = jnp.array([0] * 6 + [1] * 6, dtype=jnp.int32)

    params = init_gin_params(key, in_channels, hidden_channels,
                             out_channels, num_layers)

    fwd = jax.jit(functools.partial(gin_forward,
                                    num_graphs=num_graphs,
                                    out_channels=out_channels))
    out = fwd(params, x, edge_index, batch)
    out = jax.block_until_ready(out)

    assert out.shape == (num_graphs, out_channels)
    assert bool(jnp.all(jnp.isfinite(out)))
    print("KERNEL_OK")
</pallas_src>

<mosaic_0001>
module attributes {stable_mosaic.version = 11 : i64} {
  func.func @_gin_layer_kernel(%arg0: i32, %arg1: i32, %arg2: memref<1x1xi32, #tpu.memory_space<smem>>, %arg3: memref<1xi32, #tpu.memory_space<smem>>, %arg4: memref<128x128xbf16, #tpu.memory_space<vmem>>, %arg5: memref<128x128xbf16, #tpu.memory_space<vmem>>, %arg6: memref<128x128xbf16, #tpu.memory_space<vmem>>, %arg7: memref<1x128xf32, #tpu.memory_space<vmem>>, %arg8: memref<128x128xbf16, #tpu.memory_space<vmem>>, %arg9: memref<1x128xf32, #tpu.memory_space<vmem>>, %arg10: memref<128x128xbf16, #tpu.memory_space<vmem>>, %arg11: memref<128x128xf32, #tpu.memory_space<vmem>>) attributes {dimension_semantics = [#tpu.dimension_semantics<parallel>, #tpu.dimension_semantics<arbitrary>], iteration_bounds = array<i64: 1, 1>, scalar_prefetch = 2 : i64, scratch_operands = 1 : i64, tpu.core_type = #tpu.core_type<tc>, window_params = [{transform_indices = @transform_0, window_bounds = array<i64: 128, 128>}, {pipeline_mode = #tpu.pipeline_mode<synchronous>, transform_indices = @transform_1, window_bounds = array<i64: 128, 128>}, {pipeline_mode = #tpu.pipeline_mode<synchronous>, transform_indices = @transform_2, window_bounds = array<i64: 128, 128>}, {pipeline_mode = #tpu.pipeline_mode<synchronous>, transform_indices = @transform_3, window_bounds = array<i64: 1, 128>}, {pipeline_mode = #tpu.pipeline_mode<synchronous>, transform_indices = @transform_4, window_bounds = array<i64: 128, 128>}, {pipeline_mode = #tpu.pipeline_mode<synchronous>, transform_indices = @transform_5, window_bounds = array<i64: 1, 128>}, {transform_indices = @transform_6, window_bounds = array<i64: 128, 128>}]} {
    %c0_i32 = arith.constant 0 : i32
    %0 = arith.cmpi eq, %arg1, %c0_i32 : i32
    %1 = arith.extui %0 : i1 to i32
    %c0_i32_0 = arith.constant 0 : i32
    %2 = arith.cmpi ne, %1, %c0_i32_0 : i32
    scf.if %2 {
      %cst = arith.constant 0.000000e+00 : f32
      %11 = vector.broadcast %cst : f32 to vector<128x128xf32>
      %c0 = arith.constant 0 : index
      %c0_4 = arith.constant 0 : index
      %12 = vector.load %arg11[%c0, %c0_4] : memref<128x128xf32, #tpu.memory_space<vmem>>, vector<128x128xf32>
      tpu.vector_store %arg11[%c0, %c0_4], %11 {strides = array<i32>} : memref<128x128xf32, #tpu.memory_space<vmem>>, vector<128x128xf32>,
    } else {
    }
    %3 = arith.index_cast %arg0 : i32 to index
    %4 = memref.load %arg3[%3] : memref<1xi32, #tpu.memory_space<smem>>
    %5 = arith.cmpi slt, %arg1, %4 : i32
    %6 = arith.extui %5 : i1 to i32
    %c0_i32_1 = arith.constant 0 : i32
    %7 = arith.cmpi ne, %6, %c0_i32_1 : i32
    scf.if %7 {
      %11 = arith.index_cast %arg0 : i32 to index
      %12 = arith.index_cast %arg1 : i32 to index
      %13 = memref.load %arg2[%11, %12] : memref<1x1xi32, #tpu.memory_space<smem>>
      %c128_i32 = arith.constant 128 : i32
      %14 = arith.muli %13, %c128_i32 : i32
      %15 = tpu.assume_multiple %14, 128 : i32
      %16 = arith.index_cast %15 : i32 to index
      %c0 = arith.constant 0 : index
      %17 = vector.load %arg5[%16, %c0] : memref<128x128xbf16, #tpu.memory_space<vmem>>, vector<128x128xbf16>
      %c0_4 = arith.constant 0 : index
      %c0_5 = arith.constant 0 : index
      %18 = vector.load %arg11[%c0_4, %c0_5] : memref<128x128xf32, #tpu.memory_space<vmem>>, vector<128x128xf32>
      %c0_6 = arith.constant 0 : index
      %c0_7 = arith.constant 0 : index
      %19 = vector.load %arg4[%c0_6, %c0_7] : memref<128x128xbf16, #tpu.memory_space<vmem>>, vector<128x128xbf16>
      %cst = arith.constant dense<0.000000e+00> : vector<128x128xf32>
      %20 = tpu.matmul %19, %17, %cst {dimension_numbers = #tpu.dot_dimension_numbers<[1], [0], [0], [1], [0, 0, 1, 1], [], []>} : vector<128x128xbf16>, vector<128x128xbf16>, vector<128x128xf32> -> vector<128x128xf32>
      %21 = arith.addf %18, %20 : vector<128x128xf32>
      %c0_8 = arith.constant 0 : index
      %c0_9 = arith.constant 0 : index
      %22 = vector.load %arg11[%c0_8, %c0_9] : memref<128x128xf32, #tpu.memory_space<vmem>>, vector<128x128xf32>
      tpu.vector_store %arg11[%c0_8, %c0_9], %21 {strides = array<i32>} : memref<128x128xf32, #tpu.memory_space<vmem>>, vector<128x128xf32>,
    } else {
    }
    %c0_i32_2 = arith.constant 0 : i32
    %8 = arith.cmpi eq, %arg1, %c0_i32_2 : i32
    %9 = arith.extui %8 : i1 to i32
    %c0_i32_3 = arith.constant 0 : i32
    %10 = arith.cmpi ne, %9, %c0_i32_3 : i32
    scf.if %10 {
      %c0 = arith.constant 0 : index
      %c0_4 = arith.constant 0 : index
      %11 = vector.load %arg11[%c0, %c0_4] : memref<128x128xf32, #tpu.memory_space<vmem>>, vector<128x128xf32>
      %12 = arith.truncf %11 : vector<128x128xf32> to vector<128x128xbf16>
      %c0_5 = arith.constant 0 : index
      %c0_6 = arith.constant 0 : index
      %13 = vector.load %arg6[%c0_5, %c0_6] : memref<128x128xbf16, #tpu.memory_space<vmem>>, vector<128x128xbf16>
      %cst = arith.constant dense<0.000000e+00> : vector<128x128xf32>
      %14 = tpu.matmul %12, %13, %cst {dimension_numbers = #tpu.dot_dimension_numbers<[1], [0], [0], [1], [0, 0, 1, 1], [], []>} : vector<128x128xbf16>, vector<128x128xbf16>, vector<128x128xf32> -> vector<128x128xf32>
      %c0_7 = arith.constant 0 : index
      %c0_8 = arith.constant 0 : index
      %15 = vector.load %arg7[%c0_7, %c0_8] : memref<1x128xf32, #tpu.memory_space<vmem>>, vector<1x128xf32>
      %16 = vector.broadcast %15 : vector<1x128xf32> to vector<128x128xf32>
      %17 = arith.addf %14, %16 : vector<128x128xf32>
      %cst_9 = arith.constant 0.000000e+00 : f32
      %18 = vector.broadcast %cst_9 : f32 to vector<128x128xf32>
      %19 = arith.maximumf %17, %18 : vector<128x128xf32>
      %20 = arith.truncf %19 : vector<128x128xf32> to vector<128x128xbf16>
      %c0_10 = arith.constant 0 : index
      %c0_11 = arith.constant 0 : index
      %21 = vector.load %arg8[%c0_10, %c0_11] : memref<128x128xbf16, #tpu.memory_space<vmem>>, vector<128x128xbf16>
      %cst_12 = arith.constant dense<0.000000e+00> : vector<128x128xf32>
      %22 = tpu.matmul %20, %21, %cst_12 {dimension_numbers = #tpu.dot_dimension_numbers<[1], [0], [0], [1], [0, 0, 1, 1], [], []>} : vector<128x128xbf16>, vector<128x128xbf16>, vector<128x128xf32> -> vector<128x128xf32>
      %c0_13 = arith.constant 0 : index
      %c0_14 = arith.constant 0 : index
      %23 = vector.load %arg9[%c0_13, %c0_14] : memref<1x128xf32, #tpu.memory_space<vmem>>, vector<1x128xf32>
      %24 = vector.broadcast %23 : vector<1x128xf32> to vector<128x128xf32>
      %25 = arith.addf %22, %24 : vector<128x128xf32>
      %cst_15 = arith.constant 0.000000e+00 : f32
      %26 = vector.broadcast %cst_15 : f32 to vector<128x128xf32>
      %27 = arith.maximumf %25, %26 : vector<128x128xf32>
      %28 = arith.truncf %27 : vector<128x128xf32> to vector<128x128xbf16>
      %c0_16 = arith.constant 0 : index
      %c0_17 = arith.constant 0 : index
      %29 = vector.load %arg10[%c0_16, %c0_17] : memref<128x128xbf16, #tpu.memory_space<vmem>>, vector<128x128xbf16>
      tpu.vector_store %arg10[%c0_16, %c0_17], %28 {strides = array<i32>} : memref<128x128xbf16, #tpu.memory_space<vmem>>, vector<128x128xbf16>,
    } else {
    }
    return
  }
  func.func @transform_0(%arg0: i32, %arg1: i32, %arg2: memref<1x1xi32, #tpu.memory_space<smem>>, %arg3: memref<1xi32, #tpu.memory_space<smem>>) -> (i32, i32) {
    %0 = arith.index_cast %arg0 : i32 to index
    %1 = arith.index_cast %arg1 : i32 to index
    %2 = memref.load %arg2[%0, %1] : memref<1x1xi32, #tpu.memory_space<smem>>
    %c0_i32 = arith.constant 0 : i32
    return %arg0, %2 : i32, i32
  }
  func.func @transform_1(%arg0: i32, %arg1: i32, %arg2: memref<1x1xi32, #tpu.memory_space<smem>>, %arg3: memref<1xi32, #tpu.memory_space<smem>>) -> (i32, i32) {
    %c0_i32 = arith.constant 0 : i32
    %c0_i32_0 = arith.constant 0 : i32
    %c0_i32_1 = arith.constant 0 : i32
    return %c0_i32, %c0_i32_0 : i32, i32
  }
  func.func @transform_2(%arg0: i32, %arg1: i32, %arg2: memref<1x1xi32, #tpu.memory_space<smem>>, %arg3: memref<1xi32, #tpu.memory_space<smem>>) -> (i32, i32) {
    %c0_i32 = arith.constant 0 : i32
    %c0_i32_0 = arith.constant 0 : i32
    %c0_i32_1 = arith.constant 0 : i32
    return %c0_i32, %c0_i32_0 : i32, i32
  }
  func.func @transform_3(%arg0: i32, %arg1: i32, %arg2: memref<1x1xi32, #tpu.memory_space<smem>>, %arg3: memref<1xi32, #tpu.memory_space<smem>>) -> (i32, i32) {
    %c0_i32 = arith.constant 0 : i32
    %c0_i32_0 = arith.constant 0 : i32
    %c0_i32_1 = arith.constant 0 : i32
    return %c0_i32, %c0_i32_0 : i32, i32
  }
  func.func @transform_4(%arg0: i32, %arg1: i32, %arg2: memref<1x1xi32, #tpu.memory_space<smem>>, %arg3: memref<1xi32, #tpu.memory_space<smem>>) -> (i32, i32) {
    %c0_i32 = arith.constant 0 : i32
    %c0_i32_0 = arith.constant 0 : i32
    %c0_i32_1 = arith.constant 0 : i32
    return %c0_i32, %c0_i32_0 : i32, i32
  }
  func.func @transform_5(%arg0: i32, %arg1: i32, %arg2: memref<1x1xi32, #tpu.memory_space<smem>>, %arg3: memref<1xi32, #tpu.memory_space<smem>>) -> (i32, i32) {
    %c0_i32 = arith.constant 0 : i32
    %c0_i32_0 = arith.constant 0 : i32
    %c0_i32_1 = arith.constant 0 : i32
    return %c0_i32, %c0_i32_0 : i32, i32
  }
  func.func @transform_6(%arg0: i32, %arg1: i32, %arg2: memref<1x1xi32, #tpu.memory_space<smem>>, %arg3: memref<1xi32, #tpu.memory_space<smem>>) -> (i32, i32) {
    %c0_i32 = arith.constant 0 : i32
    %c0_i32_0 = arith.constant 0 : i32
    return %arg0, %c0_i32 : i32, i32
  }
}

module attributes {stable_mosaic.version = 11 : i64} {
  func.func @_gin_last_kernel(%arg0: i32, %arg1: i32, %arg2: memref<1x1xi32, #tpu.memory_space<smem>>, %arg3: memref<1xi32, #tpu.memory_space<smem>>, %arg4: memref<128x128xbf16, #tpu.memory_space<vmem>>, %arg5: memref<128x128xbf16, #tpu.memory_space<vmem>>, %arg6: memref<1x128xi32, #tpu.memory_space<vmem>>, %arg7: memref<128x128xbf16, #tpu.memory_space<vmem>>, %arg8: memref<1x128xf32, #tpu.memory_space<vmem>>, %arg9: memref<128x128xbf16, #tpu.memory_space<vmem>>, %arg10: memref<1x128xf32, #tpu.memory_space<vmem>>, %arg11: memref<128x128xbf16, #tpu.memory_space<vmem>>, %arg12: memref<1x128xf32, #tpu.memory_space<vmem>>, %arg13: memref<128x128xbf16, #tpu.memory_space<vmem>>, %arg14: memref<1x128xf32, #tpu.memory_space<vmem>>, %arg15: memref<8x128xf32, #tpu.memory_space<vmem>>, %arg16: memref<128x128xf32, #tpu.memory_space<vmem>>, %arg17: memref<8x128xf32, #tpu.memory_space<vmem>>) attributes {dimension_semantics = [#tpu.dimension_semantics<arbitrary>, #tpu.dimension_semantics<arbitrary>], iteration_bounds = array<i64: 1, 1>, scalar_prefetch = 2 : i64, scratch_operands = 2 : i64, tpu.core_type = #tpu.core_type<tc>, window_params = [{transform_indices = @transform_0, window_bounds = array<i64: 128, 128>}, {pipeline_mode = #tpu.pipeline_mode<synchronous>, transform_indices = @transform_1, window_bounds = array<i64: 128, 128>}, {transform_indices = @transform_2, window_bounds = array<i64: 1, 128>}, {pipeline_mode = #tpu.pipeline_mode<synchronous>, transform_indices = @transform_3, window_bounds = array<i64: 128, 128>}, {pipeline_mode = #tpu.pipeline_mode<synchronous>, transform_indices = @transform_4, window_bounds = array<i64: 1, 128>}, {pipeline_mode = #tpu.pipeline_mode<synchronous>, transform_indices = @transform_5, window_bounds = array<i64: 128, 128>}, {pipeline_mode = #tpu.pipeline_mode<synchronous>, transform_indices = @transform_6, window_bounds = array<i64: 1, 128>}, {pipeline_mode = #tpu.pipeline_mode<synchronous>, transform_indices = @transform_7, window_bounds = array<i64: 128, 128>}, {pipeline_mode = #tpu.pipeline_mode<synchronous>, transform_indices = @transform_8, window_bounds = array<i64: 1, 128>}, {pipeline_mode = #tpu.pipeline_mode<synchronous>, transform_indices = @transform_9, window_bounds = array<i64: 128, 128>}, {pipeline_mode = #tpu.pipeline_mode<synchronous>, transform_indices = @transform_10, window_bounds = array<i64: 1, 128>}, {pipeline_mode = #tpu.pipeline_mode<synchronous>, transform_indices = @transform_11, window_bounds = array<i64: 8, 128>}]} {
    %c0_i32 = arith.constant 0 : i32
    %0 = arith.cmpi eq, %arg0, %c0_i32 : i32
    %c0_i32_0 = arith.constant 0 : i32
    %1 = arith.cmpi eq, %arg1, %c0_i32_0 : i32
    %2 = arith.andi %0, %1 : i1
    %3 = arith.extui %2 : i1 to i32
    %c0_i32_1 = arith.constant 0 : i32
    %4 = arith.cmpi ne, %3, %c0_i32_1 : i32
    scf.if %4 {
      %cst = arith.constant 0.000000e+00 : f32
      %21 = vector.broadcast %cst : f32 to vector<8x128xf32>
      %c0 = arith.constant 0 : index
      %c0_10 = arith.constant 0 : index
      %22 = vector.load %arg17[%c0, %c0_10] : memref<8x128xf32, #tpu.memory_space<vmem>>, vector<8x128xf32>
      tpu.vector_store %arg17[%c0, %c0_10], %21 {strides = array<i32>} : memref<8x128xf32, #tpu.memory_space<vmem>>, vector<8x128xf32>,
    } else {
    }
    %c0_i32_2 = arith.constant 0 : i32
    %5 = arith.cmpi eq, %arg1, %c0_i32_2 : i32
    %6 = arith.extui %5 : i1 to i32
    %c0_i32_3 = arith.constant 0 : i32
    %7 = arith.cmpi ne, %6, %c0_i32_3 : i32
    scf.if %7 {
      %cst = arith.constant 0.000000e+00 : f32
      %21 = vector.broadcast %cst : f32 to vector<128x128xf32>
      %c0 = arith.constant 0 : index
      %c0_10 = arith.constant 0 : index
      %22 = vector.load %arg16[%c0, %c0_10] : memref<128x128xf32, #tpu.memory_space<vmem>>, vector<128x128xf32>
      tpu.vector_store %arg16[%c0, %c0_10], %21 {strides = array<i32>} : memref<128x128xf32, #tpu.memory_space<vmem>>, vector<128x128xf32>,
    } else {
    }
    %8 = arith.index_cast %arg0 : i32 to index
    %9 = memref.load %arg3[%8] : memref<1xi32, #tpu.memory_space<smem>>
    %10 = arith.cmpi slt, %arg1, %9 : i32
    %11 = arith.extui %10 : i1 to i32
    %c0_i32_4 = arith.constant 0 : i32
    %12 = arith.cmpi ne, %11, %c0_i32_4 : i32
    scf.if %12 {
      %21 = arith.index_cast %arg0 : i32 to index
      %22 = arith.index_cast %arg1 : i32 to index
      %23 = memref.load %arg2[%21, %22] : memref<1x1xi32, #tpu.memory_space<smem>>
      %c128_i32 = arith.constant 128 : i32
      %24 = arith.muli %23, %c128_i32 : i32
      %25 = tpu.assume_multiple %24, 128 : i32
      %26 = arith.index_cast %25 : i32 to index
      %c0 = arith.constant 0 : index
      %27 = vector.load %arg5[%26, %c0] : memref<128x128xbf16, #tpu.memory_space<vmem>>, vector<128x128xbf16>
      %c0_10 = arith.constant 0 : index
      %c0_11 = arith.constant 0 : index
      %28 = vector.load %arg16[%c0_10, %c0_11] : memref<128x128xf32, #tpu.memory_space<vmem>>, vector<128x128xf32>
      %c0_12 = arith.constant 0 : index
      %c0_13 = arith.constant 0 : index
      %29 = vector.load %arg4[%c0_12, %c0_13] : memref<128x128xbf16, #tpu.memory_space<vmem>>, vector<128x128xbf16>
      %cst = arith.constant dense<0.000000e+00> : vector<128x128xf32>
      %30 = tpu.matmul %29, %27, %cst {dimension_numbers = #tpu.dot_dimension_numbers<[1], [0], [0], [1], [0, 0, 1, 1], [], []>} : vector<128x128xbf16>, vector<128x128xbf16>, vector<128x128xf32> -> vector<128x128xf32>
      %31 = arith.addf %28, %30 : vector<128x128xf32>
      %c0_14 = arith.constant 0 : index
      %c0_15 = arith.constant 0 : index
      %32 = vector.load %arg16[%c0_14, %c0_15] : memref<128x128xf32, #tpu.memory_space<vmem>>, vector<128x128xf32>
      tpu.vector_store %arg16[%c0_14, %c0_15], %31 {strides = array<i32>} : memref<128x128xf32, #tpu.memory_space<vmem>>, vector<128x128xf32>,
    } else {
    }
    %c0_i32_5 = arith.constant 0 : i32
    %13 = arith.cmpi eq, %arg1, %c0_i32_5 : i32
    %14 = arith.extui %13 : i1 to i32
    %c0_i32_6 = arith.constant 0 : i32
    %15 = arith.cmpi ne, %14, %c0_i32_6 : i32
    scf.if %15 {
      %c0 = arith.constant 0 : index
      %c0_10 = arith.constant 0 : index
      %21 = vector.load %arg16[%c0, %c0_10] : memref<128x128xf32, #tpu.memory_space<vmem>>, vector<128x128xf32>
      %22 = arith.truncf %21 : vector<128x128xf32> to vector<128x128xbf16>
      %c0_11 = arith.constant 0 : index
      %c0_12 = arith.constant 0 : index
      %23 = vector.load %arg7[%c0_11, %c0_12] : memref<128x128xbf16, #tpu.memory_space<vmem>>, vector<128x128xbf16>
      %cst = arith.constant dense<0.000000e+00> : vector<128x128xf32>
      %24 = tpu.matmul %22, %23, %cst {dimension_numbers = #tpu.dot_dimension_numbers<[1], [0], [0], [1], [0, 0, 1, 1], [], []>} : vector<128x128xbf16>, vector<128x128xbf16>, vector<128x128xf32> -> vector<128x128xf32>
      %c0_13 = arith.constant 0 : index
      %c0_14 = arith.constant 0 : index
      %25 = vector.load %arg8[%c0_13, %c0_14] : memref<1x128xf32, #tpu.memory_space<vmem>>, vector<1x128xf32>
      %26 = vector.broadcast %25 : vector<1x128xf32> to vector<128x128xf32>
      %27 = arith.addf %24, %26 : vector<128x128xf32>
      %cst_15 = arith.constant 0.000000e+00 : f32
      %28 = vector.broadcast %cst_15 : f32 to vector<128x128xf32>
      %29 = arith.maximumf %27, %28 : vector<128x128xf32>
      %30 = arith.truncf %29 : vector<128x128xf32> to vector<128x128xbf16>
      %c0_16 = arith.constant 0 : index
      %c0_17 = arith.constant 0 : index
      %31 = vector.load %arg9[%c0_16, %c0_17] : memref<128x128xbf16, #tpu.memory_space<vmem>>, vector<128x128xbf16>
      %cst_18 = arith.constant dense<0.000000e+00> : vector<128x128xf32>
      %32 = tpu.matmul %30, %31, %cst_18 {dimension_numbers = #tpu.dot_dimension_numbers<[1], [0], [0], [1], [0, 0, 1, 1], [], []>} : vector<128x128xbf16>, vector<128x128xbf16>, vector<128x128xf32> -> vector<128x128xf32>
      %c0_19 = arith.constant 0 : index
      %c0_20 = arith.constant 0 : index
      %33 = vector.load %arg10[%c0_19, %c0_20] : memref<1x128xf32, #tpu.memory_space<vmem>>, vector<1x128xf32>
      %34 = vector.broadcast %33 : vector<1x128xf32> to vector<128x128xf32>
      %35 = arith.addf %32, %34 : vector<128x128xf32>
      %cst_21 = arith.constant 0.000000e+00 : f32
      %36 = vector.broadcast %cst_21 : f32 to vector<128x128xf32>
      %37 = arith.maximumf %35, %36 : vector<128x128xf32>
      %38 = tpu.iota {dimensions = array<i32: 0>} : vector<8x128xi32>
      %c0_22 = arith.constant 0 : index
      %c0_23 = arith.constant 0 : index
      %39 = vector.load %arg6[%c0_22, %c0_23] : memref<1x128xi32, #tpu.memory_space<vmem>>, vector<1x128xi32>
      %40 = vector.broadcast %39 : vector<1x128xi32> to vector<8x128xi32>
      %41 = arith.cmpi eq, %40, %38 : vector<8x128xi32>
      %42 = arith.extui %41 : vector<8x128xi1> to vector<8x128xi32>
      %43 = arith.sitofp %42 : vector<8x128xi32> to vector<8x128xf32>
      %44 = arith.truncf %43 : vector<8x128xf32> to vector<8x128xbf16>
      %c0_24 = arith.constant 0 : index
      %c0_25 = arith.constant 0 : index
      %45 = vector.load %arg17[%c0_24, %c0_25] : memref<8x128xf32, #tpu.memory_space<vmem>>, vector<8x128xf32>
      %46 = arith.truncf %37 : vector<128x128xf32> to vector<128x128xbf16>
      %cst_26 = arith.constant dense<0.000000e+00> : vector<8x128xf32>
      %47 = tpu.matmul %44, %46, %cst_26 {dimension_numbers = #tpu.dot_dimension_numbers<[1], [0], [0], [1], [0, 0, 1, 1], [], []>} : vector<8x128xbf16>, vector<128x128xbf16>, vector<8x128xf32> -> vector<8x128xf32>
      %48 = arith.addf %45, %47 : vector<8x128xf32>
      %c0_27 = arith.constant 0 : index
      %c0_28 = arith.constant 0 : index
      %49 = vector.load %arg17[%c0_27, %c0_28] : memref<8x128xf32, #tpu.memory_space<vmem>>, vector<8x128xf32>
      tpu.vector_store %arg17[%c0_27, %c0_28], %48 {strides = array<i32>} : memref<8x128xf32, #tpu.memory_space<vmem>>, vector<8x128xf32>,
    } else {
    }
    %c0_i32_7 = arith.constant 0 : i32
    %16 = arith.cmpi eq, %arg1, %c0_i32_7 : i32
    %c0_i32_8 = arith.constant 0 : i32
    %17 = arith.cmpi eq, %arg0, %c0_i32_8 : i32
    %18 = arith.andi %16, %17 : i1
    %19 = arith.extui %18 : i1 to i32
    %c0_i32_9 = arith.constant 0 : i32
    %20 = arith.cmpi ne, %19, %c0_i32_9 : i32
    scf.if %20 {
      %c0 = arith.constant 0 : index
      %c0_10 = arith.constant 0 : index
      %21 = vector.load %arg17[%c0, %c0_10] : memref<8x128xf32, #tpu.memory_space<vmem>>, vector<8x128xf32>
      %22 = arith.truncf %21 : vector<8x128xf32> to vector<8x128xbf16>
      %c0_11 = arith.constant 0 : index
      %c0_12 = arith.constant 0 : index
      %23 = vector.load %arg11[%c0_11, %c0_12] : memref<128x128xbf16, #tpu.memory_space<vmem>>, vector<128x128xbf16>
      %cst = arith.constant dense<0.000000e+00> : vector<8x128xf32>
      %24 = tpu.matmul %22, %23, %cst {dimension_numbers = #tpu.dot_dimension_numbers<[1], [0], [0], [1], [0, 0, 1, 1], [], []>} : vector<8x128xbf16>, vector<128x128xbf16>, vector<8x128xf32> -> vector<8x128xf32>
      %c0_13 = arith.constant 0 : index
      %c0_14 = arith.constant 0 : index
      %25 = vector.load %arg12[%c0_13, %c0_14] : memref<1x128xf32, #tpu.memory_space<vmem>>, vector<1x128xf32>
      %26 = vector.broadcast %25 : vector<1x128xf32> to vector<8x128xf32>
      %27 = arith.addf %24, %26 : vector<8x128xf32>
      %cst_15 = arith.constant 0.000000e+00 : f32
      %28 = vector.broadcast %cst_15 : f32 to vector<8x128xf32>
      %29 = arith.maximumf %27, %28 : vector<8x128xf32>
      %30 = arith.truncf %29 : vector<8x128xf32> to vector<8x128xbf16>
      %c0_16 = arith.constant 0 : index
      %c0_17 = arith.constant 0 : index
      %31 = vector.load %arg13[%c0_16, %c0_17] : memref<128x128xbf16, #tpu.memory_space<vmem>>, vector<128x128xbf16>
      %cst_18 = arith.constant dense<0.000000e+00> : vector<8x128xf32>
      %32 = tpu.matmul %30, %31, %cst_18 {dimension_numbers = #tpu.dot_dimension_numbers<[1], [0], [0], [1], [0, 0, 1, 1], [], []>} : vector<8x128xbf16>, vector<128x128xbf16>, vector<8x128xf32> -> vector<8x128xf32>
      %c0_19 = arith.constant 0 : index
      %c0_20 = arith.constant 0 : index
      %33 = vector.load %arg14[%c0_19, %c0_20] : memref<1x128xf32, #tpu.memory_space<vmem>>, vector<1x128xf32>
      %34 = vector.broadcast %33 : vector<1x128xf32> to vector<8x128xf32>
      %35 = arith.addf %32, %34 : vector<8x128xf32>
      %c0_21 = arith.constant 0 : index
      %c0_22 = arith.constant 0 : index
      %36 = vector.load %arg15[%c0_21, %c0_22] : memref<8x128xf32, #tpu.memory_space<vmem>>, vector<8x128xf32>
      tpu.vector_store %arg15[%c0_21, %c0_22], %35 {strides = array<i32>} : memref<8x128xf32, #tpu.memory_space<vmem>>, vector<8x128xf32>,
    } else {
    }
    return
  }
  func.func @transform_0(%arg0: i32, %arg1: i32, %arg2: memref<1x1xi32, #tpu.memory_space<smem>>, %arg3: memref<1xi32, #tpu.memory_space<smem>>) -> (i32, i32) {
    %0 = arith.index_cast %arg0 : i32 to index
    %1 = arith.index_cast %arg1 : i32 to index
    %2 = memref.load %arg2[%0, %1] : memref<1x1xi32, #tpu.memory_space<smem>>
    %c0_i32 = arith.constant 0 : i32
    return %arg0, %2 : i32, i32
  }
  func.func @transform_1(%arg0: i32, %arg1: i32, %arg2: memref<1x1xi32, #tpu.memory_space<smem>>, %arg3: memref<1xi32, #tpu.memory_space<smem>>) -> (i32, i32) {
    %c0_i32 = arith.constant 0 : i32
    %c0_i32_0 = arith.constant 0 : i32
    %c0_i32_1 = arith.constant 0 : i32
    return %c0_i32, %c0_i32_0 : i32, i32
  }
  func.func @transform_2(%arg0: i32, %arg1: i32, %arg2: memref<1x1xi32, #tpu.memory_space<smem>>, %arg3: memref<1xi32, #tpu.memory_space<smem>>) -> (i32, i32) {
    %c0_i32 = arith.constant 0 : i32
    %c0_i32_0 = arith.constant 0 : i32
    return %c0_i32, %arg0 : i32, i32
  }
  func.func @transform_3(%arg0: i32, %arg1: i32, %arg2: memref<1x1xi32, #tpu.memory_space<smem>>, %arg3: memref<1xi32, #tpu.memory_space<smem>>) -> (i32, i32) {
    %c0_i32 = arith.constant 0 : i32
    %c0_i32_0 = arith.constant 0 : i32
    %c0_i32_1 = arith.constant 0 : i32
    return %c0_i32, %c0_i32_0 : i32, i32
  }
  func.func @transform_4(%arg0: i32, %arg1: i32, %arg2: memref<1x1xi32, #tpu.memory_space<smem>>, %arg3: memref<1xi32, #tpu.memory_space<smem>>) -> (i32, i32) {
    %c0_i32 = arith.constant 0 : i32
    %c0_i32_0 = arith.constant 0 : i32
    %c0_i32_1 = arith.constant 0 : i32
    return %c0_i32, %c0_i32_0 : i32, i32
  }
  func.func @transform_5(%arg0: i32, %arg1: i32, %arg2: memref<1x1xi32, #tpu.memory_space<smem>>, %arg3: memref<1xi32, #tpu.memory_space<smem>>) -> (i32, i32) {
    %c0_i32 = arith.constant 0 : i32
    %c0_i32_0 = arith.constant 0 : i32
    %c0_i32_1 = arith.constant 0 : i32
    return %c0_i32, %c0_i32_0 : i32, i32
  }
  func.func @transform_6(%arg0: i32, %arg1: i32, %arg2: memref<1x1xi32, #tpu.memory_space<smem>>, %arg3: memref<1xi32, #tpu.memory_space<smem>>) -> (i32, i32) {
    %c0_i32 = arith.constant 0 : i32
    %c0_i32_0 = arith.constant 0 : i32
    %c0_i32_1 = arith.constant 0 : i32
    return %c0_i32, %c0_i32_0 : i32, i32
  }
  func.func @transform_7(%arg0: i32, %arg1: i32, %arg2: memref<1x1xi32, #tpu.memory_space<smem>>, %arg3: memref<1xi32, #tpu.memory_space<smem>>) -> (i32, i32) {
    %c0_i32 = arith.constant 0 : i32
    %c0_i32_0 = arith.constant 0 : i32
    %c0_i32_1 = arith.constant 0 : i32
    return %c0_i32, %c0_i32_0 : i32, i32
  }
  func.func @transform_8(%arg0: i32, %arg1: i32, %arg2: memref<1x1xi32, #tpu.memory_space<smem>>, %arg3: memref<1xi32, #tpu.memory_space<smem>>) -> (i32, i32) {
    %c0_i32 = arith.constant 0 : i32
    %c0_i32_0 = arith.constant 0 : i32
    %c0_i32_1 = arith.constant 0 : i32
    return %c0_i32, %c0_i32_0 : i32, i32
  }
  func.func @transform_9(%arg0: i32, %arg1: i32, %arg2: memref<1x1xi32, #tpu.memory_space<smem>>, %arg3: memref<1xi32, #tpu.memory_space<smem>>) -> (i32, i32) {
    %c0_i32 = arith.constant 0 : i32
    %c0_i32_0 = arith.constant 0 : i32
    %c0_i32_1 = arith.constant 0 : i32
    return %c0_i32, %c0_i32_0 : i32, i32
  }
  func.func @transform_10(%arg0: i32, %arg1: i32, %arg2: memref<1x1xi32, #tpu.memory_space<smem>>, %arg3: memref<1xi32, #tpu.memory_space<smem>>) -> (i32, i32) {
    %c0_i32 = arith.constant 0 : i32
    %c0_i32_0 = arith.constant 0 : i32
    %c0_i32_1 = arith.constant 0 : i32
    return %c0_i32, %c0_i32_0 : i32, i32
  }
  func.func @transform_11(%arg0: i32, %arg1: i32, %arg2: memref<1x1xi32, #tpu.memory_space<smem>>, %arg3: memref<1xi32, #tpu.memory_space<smem>>) -> (i32, i32) {
    %c0_i32 = arith.constant 0 : i32
    %c0_i32_0 = arith.constant 0 : i32
    %c0_i32_1 = arith.constant 0 : i32
    return %c0_i32, %c0_i32_0 : i32, i32
  }
}

</mosaic_0001>

<bundles_post_ra>
// kernel: gin_forward.2
= control target key start
LH: loop header
LB: loop body
LE: loop exit
PB: predicated region body
PF: predicated region fallthrough
CT: control target
= control target key end

     0   :  { %v1173_v0 = vmov 0.0   ;;  %s1339_s0 = inlined_call_operand.<no memory space> [shape: s32[1,1], index: 0, kind: input, shape index: {}]   ;;  %s1340_s1 = inlined_call_operand.<no memory space> [shape: s32[1], index: 1, kind: input, shape index: {}]   ;;  %s1341_s3 = inlined_call_operand.vmem [shape: bf16[128,128], index: 3, kind: input, shape index: {}]   ;;  %s1342_s4 = inlined_call_operand.vmem [shape: bf16[128,128], index: 4, kind: input, shape index: {}]   ;;  %s1343_s5 = inlined_call_operand.vmem [shape: f32[1,128], index: 5, kind: input, shape index: {}]   ;;  %s1344_s6 = inlined_call_operand.vmem [shape: bf16[128,128], index: 6, kind: input, shape index: {}]   ;;  %s1345_s7 = inlined_call_operand.vmem [shape: f32[1,128], index: 7, kind: input, shape index: {}]   ;;  %s1346_s8 = inlined_call_operand.vmem [shape: bf16[128,128], index: 8, kind: output, shape index: {}]   ;;  %s1347_s2 = inlined_call_operand.vmem [shape: bf16[128,128], index: 2, kind: input, shape index: {}]  }
   0x1   :  { %13 = sst [smem:[#allocation4]] %s1339_s0  ;;  %p51_p0 = scmp.lt.s32.totalorder %s1339_s0, 0  ;;  %64 = vst [vmem:[#allocation2] sm:$0xff] %v1173_v0  ;;  %65 = vst [vmem:[#allocation2 + $0x8] sm:$0xff] %v1173_v0 }
   0x2   :  { %66 = vst [vmem:[#allocation2 + $0x10] sm:$0xff] %v1173_v0  ;;  %67 = vst [vmem:[#allocation2 + $0x18] sm:$0xff] %v1173_v0  ;;  %p864_p1 = scmp.le.s32.totalorder %s1340_s1, 0 }
   0x3   :  { %68 = vst [vmem:[#allocation2 + $0x20] sm:$0xff] %v1173_v0  ;;  %69 = vst [vmem:[#allocation2 + $0x28] sm:$0xff] %v1173_v0  ;;  %s1349_s0 = smov (!%p51_p0, %s1339_s0), 0  ;;  %s88_s19 = sld [smem:[#allocation4]] (!%p864_p1) }
   0x4   :  { %70 = vst [vmem:[#allocation2 + $0x30] sm:$0xff] %v1173_v0  ;;  %71 = vst [vmem:[#allocation2 + $0x38] sm:$0xff] %v1173_v0  ;;  %s862_s13 = sshll.u32 %s1349_s0, 2  ;;  %84 = sbr.rel (%p864_p1) target bundleno = 272 (0x110), region = 33 }
   0x5   :  { %72 = vst [vmem:[#allocation2 + $0x40] sm:$0xff] %v1173_v0  ;;  %73 = vst [vmem:[#allocation2 + $0x48] sm:$0xff] %v1173_v0  ;;  %s1235_s16 = scalar_lea.vmem %s1347_s2, %s862_s13 }
   0x6   :  { %74 = vst [vmem:[#allocation2 + $0x50] sm:$0xff] %v1173_v0  ;;  %75 = vst [vmem:[#allocation2 + $0x58] sm:$0xff] %v1173_v0  ;;  %v1149_v1 = vld [vmem:[%s1235_s16] sm:$0xff] (!%p864_p1)   ;;  %v1151_v11 = vld [vmem:[%s1235_s16 + $0x8] sm:$0xff] (!%p864_p1)  }
   0x7   :  { %76 = vst [vmem:[#allocation2 + $0x60] sm:$0xff] %v1173_v0  ;;  %77 = vst [vmem:[#allocation2 + $0x68] sm:$0xff] %v1173_v0  ;;  %v1150_v2 = vld [vmem:[%s1235_s16 + $0x20] sm:$0xff] (!%p864_p1)   ;;  %1044 = vmatprep.mubr.bf16.mxu0 (!%p864_p1), %v1149_v1  ;;  %v1152_v12 = vld [vmem:[%s1235_s16 + $0x28] sm:$0xff] (!%p864_p1)  }
   0x8   :  { %78 = vst [vmem:[#allocation2 + $0x70] sm:$0xff] %v1173_v0  ;;  %79 = vst [vmem:[#allocation2 + $0x78] sm:$0xff] %v1173_v0  ;;  %1052 = vmatprep.mubr.bf16.mxu1 (!%p864_p1), %v1150_v2  ;;  %v1153_v13 = vld [vmem:[%s1235_s16 + $0x10] sm:$0xff] (!%p864_p1)   ;;  %v1155_v15 = vld [vmem:[%s1235_s16 + $0x18] sm:$0xff] (!%p864_p1)  }
   0x9   :  { %s865_s20 = sshll.u32 (!%p864_p1), %s88_s19, 7  ;;  %v1154_v14 = vld [vmem:[%s1235_s16 + $0x30] sm:$0xff] (!%p864_p1)   ;;  %v1156_v16 = vld [vmem:[%s1235_s16 + $0x38] sm:$0xff] (!%p864_p1)   ;;  %v110_v19 = vld [vmem:[#allocation2] sm:$0xff] (!%p864_p1) }
   0xa   :  { %s90_s21 = sshra.s32 (!%p864_p1), %s865_s20, 3  ;;  %v112_v17 = vld [vmem:[#allocation2 + $0x10] sm:$0xff] (!%p864_p1)  ;;  %v113_v23 = vld [vmem:[#allocation2 + $0x18] sm:$0xff] (!%p864_p1)  ;;  %v111_v29 = vld [vmem:[#allocation2 + $0x8] sm:$0xff] (!%p864_p1) }
   0xb   :  { %s866_s0 = sshll.u32 %s90_s21, 2  ;;  %v116_v41 = vld [vmem:[#allocation2 + $0x30] sm:$0xff]  ;;  %v114_v43 = vld [vmem:[#allocation2 + $0x20] sm:$0xff]  ;;  %v117_v47 = vld [vmem:[#allocation2 + $0x38] sm:$0xff] }
   0xc   :  { %s1245_s2 = scalar_lea.vmem %s1341_s3, %s866_s0  ;;  %v118_v20 = vld [vmem:[#allocation2 + $0x40] sm:$0xff]  ;;  %v119_v30 = vld [vmem:[#allocation2 + $0x48] sm:$0xff] }
   0xd   :  { %v1141_v3 = vld [vmem:[%s1245_s2] sm:$0xff]   ;;  %v1142_v4 = vld [vmem:[%s1245_s2 + $0x8] sm:$0xff]   ;;  %v1143_v5 = vld [vmem:[%s1245_s2 + $0x10] sm:$0xff]  }
   0xe   :  { %1028 = vmatprep.subr.bf16.mxu0 %v1141_v3  ;;  %1124 = vmatprep.subr.bf16.mxu1 %v1141_v3  ;;  %v1144_v6 = vld [vmem:[%s1245_s2 + $0x18] sm:$0xff]   ;;  %v1145_v7 = vld [vmem:[%s1245_s2 + $0x20] sm:$0xff]   ;;  %v1146_v8 = vld [vmem:[%s1245_s2 + $0x28] sm:$0xff]  }
   0xf   :  { %1029 = vmatpush3.bf16.msra.mxu0 %v1141_v3  ;;  %1132 = vmatpush3.bf16.msra.mxu1 %v1141_v3  ;;  %v1147_v9 = vld [vmem:[%s1245_s2 + $0x30] sm:$0xff]   ;;  %v1148_v10 = vld [vmem:[%s1245_s2 + $0x38] sm:$0xff]   ;;  %v122_v44 = vld [vmem:[#allocation2 + $0x60] sm:$0xff] }
  0x10   :  { %1030 = vmatprep.subr.bf16.mxu0 %v1142_v4  ;;  %1125 = vmatprep.subr.bf16.mxu1 %v1142_v4  ;;  %v120_v18 = vld [vmem:[#allocation2 + $0x50] sm:$0xff]  ;;  %v121_v24 = vld [vmem:[#allocation2 + $0x58] sm:$0xff]  ;;  %v115_v53 = vld [vmem:[#allocation2 + $0x28] sm:$0xff] }
  0x11   :  { %v124_v42 = vld [vmem:[#allocation2 + $0x70] sm:$0xff]  ;;  %v125_v48 = vld [vmem:[#allocation2 + $0x78] sm:$0xff]  ;;  %v123_v54 = vld [vmem:[#allocation2 + $0x68] sm:$0xff] }
  0x13   :  { %1031 = vmatpush3.bf16.msra.mxu0 %v1142_v4  ;;  %1133 = vmatpush3.bf16.msra.mxu1 %v1142_v4 }
  0x14   :  { %1032 = vmatprep.subr.bf16.mxu0 %v1143_v5  ;;  %1126 = vmatprep.subr.bf16.mxu1 %v1143_v5 }
  0x17   :  { %1033 = vmatpush3.bf16.msra.mxu0 %v1143_v5  ;;  %1134 = vmatpush3.bf16.msra.mxu1 %v1143_v5 }
  0x18   :  { %1034 = vmatprep.subr.bf16.mxu0 %v1144_v6  ;;  %1127 = vmatprep.subr.bf16.mxu1 %v1144_v6 }
  0x1b   :  { %1035 = vmatpush3.bf16.msra.mxu0 %v1144_v6  ;;  %1135 = vmatpush3.bf16.msra.mxu1 %v1144_v6 }
  0x1c   :  { %1036 = vmatprep.subr.bf16.mxu0 %v1145_v7  ;;  %1128 = vmatprep.subr.bf16.mxu1 %v1145_v7 }
  0x1f   :  { %1037 = vmatpush3.bf16.msra.mxu0 %v1145_v7  ;;  %1136 = vmatpush3.bf16.msra.mxu1 %v1145_v7 }
  0x20   :  { %1038 = vmatprep.subr.bf16.mxu0 %v1146_v8  ;;  %1129 = vmatprep.subr.bf16.mxu1 %v1146_v8 }
  0x23   :  { %1039 = vmatpush3.bf16.msra.mxu0 %v1146_v8  ;;  %1137 = vmatpush3.bf16.msra.mxu1 %v1146_v8 }
  0x24   :  { %1040 = vmatprep.subr.bf16.mxu0 %v1147_v9  ;;  %1130 = vmatprep.subr.bf16.mxu1 %v1147_v9 }
  0x27   :  { %1041 = vmatpush3.bf16.msra.mxu0 %v1147_v9  ;;  %1138 = vmatpush3.bf16.msra.mxu1 %v1147_v9 }
  0x28   :  { %1042 = vmatprep.subr.bf16.mxu0 %v1148_v10  ;;  %1131 = vmatprep.subr.bf16.mxu1 %v1148_v10 }
  0x2b   :  { %1043 = vmatpush3.bf16.msra.mxu0 %v1148_v10  ;;  %1139 = vmatpush3.bf16.msra.mxu1 %v1148_v10 }
  0x2e   :  { %1045 = vmatmul.mubr.bf16.vlgmr.msra.gmra.mrb[0].mxu0 %v1151_v11  ;;  %1053 = vmatmul.mubr.bf16.vlgmr.msra.gmra.mrb[0].mxu1 %v1152_v12 }
  0x2f   :  { %1048 = vmatprep.mubr.bf16.mxu0 %v1153_v13  ;;  %1056 = vmatprep.mubr.bf16.mxu1 %v1154_v14 }
  0x36   :  { %1049 = vmatmul.mubr.bf16.gmra.mrb[4].mxu0 %v1155_v15  ;;  %1057 = vmatmul.mubr.bf16.gmra.mrb[4].mxu1 %v1156_v16 }
 0x101   :  { %v1046_v21 = vpop.f32.mrb[0].mxu0  ;;  %v1054_v22 = vpop.f32.mrb[0].mxu1 }
 0x102   :  { %v337_v25 = vadd.f32 %v1046_v21, %v112_v17  ;;  %v345_v26 = vadd.f32 %v1054_v22, %v120_v18  ;;  %v272_v27 = vpop.f32.mrb[1].mxu0  ;;  %v304_v28 = vpop.f32.mrb[1].mxu1 }
 0x103   :  { %v335_v31 = vadd.f32 %v272_v27, %v110_v19  ;;  %v343_v32 = vadd.f32 %v304_v28, %v118_v20  ;;  %v1047_v33 = vpop.f32.mrb[2].mxu0  ;;  %v1055_v34 = vpop.f32.mrb[2].mxu1 }
 0x104   :  { %353 = vst [vmem:[#allocation2 + $0x10] sm:$0xff] %v337_v25  ;;  %361 = vst [vmem:[#allocation2 + $0x50] sm:$0xff] %v345_v26  ;;  %v338_v35 = vadd.f32 %v1047_v33, %v113_v23  ;;  %v346_v36 = vadd.f32 %v1055_v34, %v121_v24  ;;  %v275_v37 = vpop.f32.mrb[3].mxu0  ;;  %v307_v38 = vpop.f32.mrb[3].mxu1 }
 0x105   :  { %351 = vst [vmem:[#allocation2] sm:$0xff] %v335_v31  ;;  %359 = vst [vmem:[#allocation2 + $0x40] sm:$0xff] %v343_v32  ;;  %v336_v39 = vadd.f32 %v275_v37, %v111_v29  ;;  %v344_v40 = vadd.f32 %v307_v38, %v119_v30 }
 0x106   :  { %354 = vst [vmem:[#allocation2 + $0x18] sm:$0xff] %v338_v35  ;;  %362 = vst [vmem:[#allocation2 + $0x58] sm:$0xff] %v346_v36 }
 0x107   :  { %352 = vst [vmem:[#allocation2 + $0x8] sm:$0xff] %v336_v39  ;;  %360 = vst [vmem:[#allocation2 + $0x48] sm:$0xff] %v344_v40 }
 0x109   :  { %v1050_v45 = vpop.f32.mrb[4].mxu0  ;;  %v1058_v46 = vpop.f32.mrb[4].mxu1 }
 0x10a   :  { %v341_v49 = vadd.f32 %v1050_v45, %v116_v41  ;;  %v349_v50 = vadd.f32 %v1058_v46, %v124_v42  ;;  %v288_v51 = vpop.f32.mrb[5].mxu0  ;;  %v320_v52 = vpop.f32.mrb[5].mxu1 }
 0x10b   :  { %v339_v55 = vadd.f32 %v288_v51, %v114_v43  ;;  %v347_v56 = vadd.f32 %v320_v52, %v122_v44  ;;  %v1051_v57 = vpop.f32.mrb[6].mxu0  ;;  %v1059_v58 = vpop.f32.mrb[6].mxu1 }
 0x10c   :  { %357 = vst [vmem:[#allocation2 + $0x30] sm:$0xff] %v341_v49  ;;  %365 = vst [vmem:[#allocation2 + $0x70] sm:$0xff] %v349_v50  ;;  %v342_v59 = vadd.f32 %v1051_v57, %v117_v47  ;;  %v350_v60 = vadd.f32 %v1059_v58, %v125_v48  ;;  %v291_v61 = vpop.f32.mrb[7].mxu0  ;;  %v323_v62 = vpop.f32.mrb[7].mxu1 }
 0x10d   :  { %355 = vst [vmem:[#allocation2 + $0x20] sm:$0xff] %v339_v55  ;;  %363 = vst [vmem:[#allocation2 + $0x60] sm:$0xff] %v347_v56  ;;  %v340_v63 = vadd.f32 %v291_v61, %v115_v53  ;;  %v348_v0 = vadd.f32 %v323_v62, %v123_v54 }
 0x10e   :  { %358 = vst [vmem:[#allocation2 + $0x38] sm:$0xff] %v342_v59  ;;  %366 = vst [vmem:[#allocation2 + $0x78] sm:$0xff] %v350_v60 }
 0x10f   :  { %356 = vst [vmem:[#allocation2 + $0x28] sm:$0xff] %v340_v63  ;;  %364 = vst [vmem:[#allocation2 + $0x68] sm:$0xff] %v348_v0 }
 0x110 PF:  { %v1157_v1 = vld [vmem:[%s1342_s4] sm:$0xff]   ;;  %v1158_v2 = vld [vmem:[%s1342_s4 + $0x8] sm:$0xff]   ;;  %v1159_v3 = vld [vmem:[%s1342_s4 + $0x10] sm:$0xff]  }
 0x111   :  { %1060 = vmatprep.subr.bf16.mxu0 %v1157_v1  ;;  %v1160_v4 = vld [vmem:[%s1342_s4 + $0x18] sm:$0xff]   ;;  %v370_v5 = vld [vmem:[#allocation2] sm:$0xff]  ;;  %v371_v6 = vld [vmem:[#allocation2 + $0x8] sm:$0xff] }
 0x112   :  { %1061 = vmatpush3.bf16.msra.mxu0 %v1157_v1  ;;  %v386_v7 = vpack.c.bf16 %v371_v6, %v370_v5  ;;  %v1161_v8 = vld [vmem:[%s1342_s4 + $0x20] sm:$0xff]   ;;  %v1166_v10 = vld [vmem:[%s1344_s6 + $0x8] sm:$0xff]   ;;  %v1167_v12 = vld [vmem:[%s1344_s6 + $0x10] sm:$0xff]  }
 0x113   :  { %1062 = vmatprep.subr.bf16.mxu0 %v1158_v2  ;;  %v1165_v9 = vld [vmem:[%s1344_s6] sm:$0xff]   ;;  %v1162_v11 = vld [vmem:[%s1342_s4 + $0x28] sm:$0xff]   ;;  %v1163_v13 = vld [vmem:[%s1342_s4 + $0x30] sm:$0xff]  }
 0x114   :  { %1076 = vmatprep.mubr.bf16.mxu0 %v386_v7  ;;  %1092 = vmatprep.subr.bf16.mxu1 %v1165_v9  ;;  %v1168_v14 = vld [vmem:[%s1344_s6 + $0x18] sm:$0xff]   ;;  %v1169_v16 = vld [vmem:[%s1344_s6 + $0x20] sm:$0xff]   ;;  %v372_v17 = vld [vmem:[#allocation2 + $0x10] sm:$0xff] }
 0x115   :  { %1093 = vmatpush3.bf16.msra.mxu1 %v1165_v9  ;;  %v1164_v15 = vld [vmem:[%s1342_s4 + $0x38] sm:$0xff]   ;;  %v374_v19 = vld [vmem:[#allocation2 + $0x20] sm:$0xff]  ;;  %v1170_v22 = vld [vmem:[%s1344_s6 + $0x28] sm:$0xff]  }
 0x116   :  { %1063 = vmatpush3.bf16.msra.mxu0 %v1158_v2  ;;  %1094 = vmatprep.subr.bf16.mxu1 %v1166_v10  ;;  %v373_v18 = vld [vmem:[#allocation2 + $0x18] sm:$0xff]  ;;  %v375_v20 = vld [vmem:[#allocation2 + $0x28] sm:$0xff]  ;;  %v376_v24 = vld [vmem:[#allocation2 + $0x30] sm:$0xff] }
 0x117   :  { %1064 = vmatprep.subr.bf16.mxu0 %v1159_v3  ;;  %v387_v21 = vpack.c.bf16 %v373_v18, %v372_v17  ;;  %v388_v23 = vpack.c.bf16 %v375_v20, %v374_v19  ;;  %v377_v25 = vld [vmem:[#allocation2 + $0x38] sm:$0xff]  ;;  %v378_v26 = vld [vmem:[#allocation2 + $0x40] sm:$0xff]  ;;  %v379_v27 = vld [vmem:[#allocation2 + $0x48] sm:$0xff] }
 0x118   :  { %v389_v28 = vpack.c.bf16 %v377_v25, %v376_v24  ;;  %v390_v29 = vpack.c.bf16 %v379_v27, %v378_v26  ;;  %v380_v30 = vld [vmem:[#allocation2 + $0x50] sm:$0xff]  ;;  %v381_v31 = vld [vmem:[#allocation2 + $0x58] sm:$0xff]  ;;  %v382_v32 = vld [vmem:[#allocation2 + $0x60] sm:$0xff] }
 0x119   :  { %1095 = vmatpush3.bf16.msra.mxu1 %v1166_v10  ;;  %v383_v33 = vld [vmem:[#allocation2 + $0x68] sm:$0xff]  ;;  %v391_v34 = vpack.c.bf16 %v381_v31, %v380_v30  ;;  %v384_v36 = vld [vmem:[#allocation2 + $0x70] sm:$0xff]  ;;  %v385_v37 = vld [vmem:[#allocation2 + $0x78] sm:$0xff] }
 0x11a   :  { %1065 = vmatpush3.bf16.msra.mxu0 %v1159_v3  ;;  %1096 = vmatprep.subr.bf16.mxu1 %v1167_v12  ;;  %v392_v35 = vpack.c.bf16 %v383_v33, %v382_v32  ;;  %v393_v38 = vpack.c.bf16 %v385_v37, %v384_v36  ;;  %v1171_v39 = vld [vmem:[%s1344_s6 + $0x30] sm:$0xff]   ;;  %v1172_v40 = vld [vmem:[%s1344_s6 + $0x38] sm:$0xff]   ;;  %v883_v41 = vld [vmem:[%s1343_s5] ss:$0 sm:$0xff] }
 0x11b   :  { %1066 = vmatprep.subr.bf16.mxu0 %v1160_v4 }
 0x11d   :  { %1097 = vmatpush3.bf16.msra.mxu1 %v1167_v12 }
 0x11e   :  { %1067 = vmatpush3.bf16.msra.mxu0 %v1160_v4  ;;  %1098 = vmatprep.subr.bf16.mxu1 %v1168_v14 }
 0x11f   :  { %1068 = vmatprep.subr.bf16.mxu0 %v1161_v8 }
 0x121   :  { %1099 = vmatpush3.bf16.msra.mxu1 %v1168_v14 }
 0x122   :  { %1069 = vmatpush3.bf16.msra.mxu0 %v1161_v8  ;;  %1100 = vmatprep.subr.bf16.mxu1 %v1169_v16 }
 0x123   :  { %1070 = vmatprep.subr.bf16.mxu0 %v1162_v11 }
 0x125   :  { %1101 = vmatpush3.bf16.msra.mxu1 %v1169_v16 }
 0x126   :  { %1071 = vmatpush3.bf16.msra.mxu0 %v1162_v11  ;;  %1102 = vmatprep.subr.bf16.mxu1 %v1170_v22 }
 0x127   :  { %1072 = vmatprep.subr.bf16.mxu0 %v1163_v13 }
 0x129   :  { %1103 = vmatpush3.bf16.msra.mxu1 %v1170_v22 }
 0x12a   :  { %1073 = vmatpush3.bf16.msra.mxu0 %v1163_v13  ;;  %1104 = vmatprep.subr.bf16.mxu1 %v1171_v39 }
 0x12b   :  { %1074 = vmatprep.subr.bf16.mxu0 %v1164_v15 }
 0x12d   :  { %1105 = vmatpush3.bf16.msra.mxu1 %v1171_v39 }
 0x12e   :  { %1075 = vmatpush3.bf16.msra.mxu0 %v1164_v15  ;;  %1106 = vmatprep.subr.bf16.mxu1 %v1172_v40 }
 0x131   :  { %1077 = vmatmul.mubr.bf16.vlgmr.msra.gmra.mrb[0].mxu0 %v387_v21  ;;  %1107 = vmatpush3.bf16.msra.mxu1 %v1172_v40 }
 0x132   :  { %1080 = vmatprep.mubr.bf16.mxu0 %v388_v23 }
 0x139   :  { %1081 = vmatmul.mubr.bf16.gmra.mrb[4].mxu0 %v389_v28 }
 0x13a   :  { %1084 = vmatprep.mubr.bf16.mxu0 %v390_v29 }
 0x141   :  { %1085 = vmatmul.mubr.bf16.gmra.mrb[8].mxu0 %v391_v34  ;;  %v892_v34 = vld [vmem:[%s1345_s7] ss:$0 sm:$0xff] }
 0x142   :  { %1088 = vmatprep.mubr.bf16.mxu0 %v392_v35 }
 0x149   :  { %1089 = vmatmul.mubr.bf16.gmra.mrb[12].mxu0 %v393_v38 }
 0x204   :  { %v1078_v42 = vpop.f32.mrb[0].mxu0 }
 0x205   :  { %v508_v43 = vadd.f32 %v1078_v42, %v883_v41  ;;  %v499_v44 = vpop.f32.mrb[1].mxu0 }
 0x206   :  { %v500_v45 = vadd.f32 %v883_v41, %v499_v44  ;;  %v1079_v46 = vpop.f32.mrb[2].mxu0 }
 0x207   :  { %v511_v47 = vadd.f32 %v1079_v46, %v883_v41  ;;  %v502_v48 = vpop.f32.mrb[3].mxu0  ;;  %v564_v50 = vmax.f32 %v508_v43, 0.0 }
 0x208   :  { %v503_v49 = vadd.f32 %v883_v41, %v502_v48  ;;  %v562_v52 = vmax.f32 %v500_v45, 0.0 }
 0x209   :  { %v565_v51 = vmax.f32 %v511_v47, 0.0 }
 0x20a   :  { %v563_v53 = vmax.f32 %v503_v49, 0.0 }
 0x20b   :  { %v579_v54 = vpack.c.bf16 %v565_v51, %v564_v50 }
 0x20c   :  { %v1082_v55 = vpop.f32.mrb[4].mxu0  ;;  %v578_v56 = vpack.c.bf16 %v563_v53, %v562_v52 }
 0x20d   :  { %v524_v57 = vadd.f32 %v1082_v55, %v883_v41  ;;  %v515_v58 = vpop.f32.mrb[5].mxu0 }
 0x20e   :  { %v516_v59 = vadd.f32 %v883_v41, %v515_v58  ;;  %v1083_v60 = vpop.f32.mrb[6].mxu0  ;;  %1108 = vmatprep.mubr.bf16.mxu1 %v578_v56 }
 0x20f   :  { %v527_v61 = vadd.f32 %v1083_v60, %v883_v41  ;;  %v518_v62 = vpop.f32.mrb[7].mxu0  ;;  %1109 = vmatmul.mubr.bf16.vlgmr.msra.gmra.mrb[0].mxu1 %v579_v54  ;;  %v568_v0 = vmax.f32 %v524_v57, 0.0 }
 0x210   :  { %v519_v63 = vadd.f32 %v883_v41, %v518_v62  ;;  %v566_v2 = vmax.f32 %v516_v59, 0.0 }
 0x211   :  { %v569_v1 = vmax.f32 %v527_v61, 0.0 }
 0x212   :  { %v567_v3 = vmax.f32 %v519_v63, 0.0 }
 0x213   :  { %v581_v4 = vpack.c.bf16 %v569_v1, %v568_v0 }
 0x214   :  { %v580_v5 = vpack.c.bf16 %v567_v3, %v566_v2  ;;  %v1086_v6 = vpop.f32.mrb[8].mxu0 }
 0x215   :  { %v540_v7 = vadd.f32 %v1086_v6, %v883_v41  ;;  %v531_v8 = vpop.f32.mrb[9].mxu0 }
 0x216   :  { %v532_v9 = vadd.f32 %v883_v41, %v531_v8  ;;  %v1087_v10 = vpop.f32.mrb[10].mxu0  ;;  %1112 = vmatprep.mubr.bf16.mxu1 %v580_v5 }
 0x217   :  { %v543_v11 = vadd.f32 %v1087_v10, %v883_v41  ;;  %v534_v12 = vpop.f32.mrb[11].mxu0  ;;  %1113 = vmatmul.mubr.bf16.gmra.mrb[4].mxu1 %v581_v4  ;;  %v572_v14 = vmax.f32 %v540_v7, 0.0 }
 0x218   :  { %v535_v13 = vadd.f32 %v883_v41, %v534_v12  ;;  %v570_v16 = vmax.f32 %v532_v9, 0.0 }
 0x219   :  { %v573_v15 = vmax.f32 %v543_v11, 0.0 }
 0x21a   :  { %v571_v17 = vmax.f32 %v535_v13, 0.0 }
 0x21b   :  { %v583_v18 = vpack.c.bf16 %v573_v15, %v572_v14 }
 0x21c   :  { %v582_v19 = vpack.c.bf16 %v571_v17, %v570_v16  ;;  %v1090_v20 = vpop.f32.mrb[12].mxu0 }
 0x21d   :  { %v556_v21 = vadd.f32 %v1090_v20, %v883_v41  ;;  %v547_v22 = vpop.f32.mrb[13].mxu0 }
 0x21e   :  { %v548_v23 = vadd.f32 %v883_v41, %v547_v22  ;;  %v1091_v24 = vpop.f32.mrb[14].mxu0  ;;  %1116 = vmatprep.mubr.bf16.mxu1 %v582_v19 }
 0x21f   :  { %v559_v25 = vadd.f32 %v1091_v24, %v883_v41  ;;  %v550_v26 = vpop.f32.mrb[15].mxu0  ;;  %1117 = vmatmul.mubr.bf16.gmra.mrb[8].mxu1 %v583_v18  ;;  %v576_v28 = vmax.f32 %v556_v21, 0.0 }
 0x220   :  { %v551_v27 = vadd.f32 %v883_v41, %v550_v26  ;;  %v574_v30 = vmax.f32 %v548_v23, 0.0 }
 0x221   :  { %v577_v29 = vmax.f32 %v559_v25, 0.0 }
 0x222   :  { %v575_v31 = vmax.f32 %v551_v27, 0.0 }
 0x223   :  { %v585_v32 = vpack.c.bf16 %v577_v29, %v576_v28 }
 0x224   :  { %v584_v33 = vpack.c.bf16 %v575_v31, %v574_v30 }
 0x226   :  { %1120 = vmatprep.mubr.bf16.mxu1 %v584_v33 }
 0x227   :  { %1121 = vmatmul.mubr.bf16.gmra.mrb[12].mxu1 %v585_v32 }
 0x2e2   :  { %v1110_v35 = vpop.f32.mrb[0].mxu1 }
 0x2e3   :  { %v700_v36 = vadd.f32 %v1110_v35, %v892_v34  ;;  %v691_v37 = vpop.f32.mrb[1].mxu1 }
 0x2e4   :  { %v692_v38 = vadd.f32 %v892_v34, %v691_v37  ;;  %v1111_v39 = vpop.f32.mrb[2].mxu1 }
 0x2e5   :  { %v703_v40 = vadd.f32 %v1111_v39, %v892_v34  ;;  %v694_v42 = vpop.f32.mrb[3].mxu1  ;;  %v756_v43 = vmax.f32 %v700_v36, 0.0 }
 0x2e6   :  { %v695_v41 = vadd.f32 %v892_v34, %v694_v42  ;;  %v754_v45 = vmax.f32 %v692_v38, 0.0 }
 0x2e7   :  { %v757_v44 = vmax.f32 %v703_v40, 0.0 }
 0x2e8   :  { %v755_v46 = vmax.f32 %v695_v41, 0.0 }
 0x2e9   :  { %v941_v47 = vpack.c.bf16 %v757_v44, %v756_v43 }
 0x2ea   :  { %v936_v48 = vpack.c.bf16 %v755_v46, %v754_v45  ;;  %v1114_v49 = vpop.f32.mrb[4].mxu1 }
 0x2eb   :  { %973 = vst [vmem:[%s1346_s8 + $0x8] sm:$0xff] %v941_v47   ;;  %v716_v50 = vadd.f32 %v1114_v49, %v892_v34  ;;  %v707_v51 = vpop.f32.mrb[5].mxu1 }
 0x2ec   :  { %937 = vst [vmem:[%s1346_s8] sm:$0xff] %v936_v48   ;;  %v708_v52 = vadd.f32 %v892_v34, %v707_v51  ;;  %v1115_v53 = vpop.f32.mrb[6].mxu1 }
 0x2ed   :  { %v719_v54 = vadd.f32 %v1115_v53, %v892_v34  ;;  %v710_v55 = vpop.f32.mrb[7].mxu1  ;;  %v760_v57 = vmax.f32 %v716_v50, 0.0 }
 0x2ee   :  { %v711_v56 = vadd.f32 %v892_v34, %v710_v55  ;;  %v758_v59 = vmax.f32 %v708_v52, 0.0 }
 0x2ef   :  { %v761_v58 = vmax.f32 %v719_v54, 0.0 }
 0x2f0   :  { %v759_v60 = vmax.f32 %v711_v56, 0.0 }
 0x2f1   :  { %v951_v61 = vpack.c.bf16 %v761_v58, %v760_v57 }
 0x2f2   :  { %v946_v62 = vpack.c.bf16 %v759_v60, %v758_v59  ;;  %v1118_v63 = vpop.f32.mrb[8].mxu1 }
 0x2f3   :  { %975 = vst [vmem:[%s1346_s8 + $0x18] sm:$0xff] %v951_v61   ;;  %v732_v0 = vadd.f32 %v1118_v63, %v892_v34  ;;  %v723_v1 = vpop.f32.mrb[9].mxu1 }
 0x2f4   :  { %974 = vst [vmem:[%s1346_s8 + $0x10] sm:$0xff] %v946_v62   ;;  %v724_v2 = vadd.f32 %v892_v34, %v723_v1  ;;  %v1119_v3 = vpop.f32.mrb[10].mxu1 }
 0x2f5   :  { %v735_v4 = vadd.f32 %v1119_v3, %v892_v34  ;;  %v726_v5 = vpop.f32.mrb[11].mxu1  ;;  %v764_v7 = vmax.f32 %v732_v0, 0.0 }
 0x2f6   :  { %v727_v6 = vadd.f32 %v892_v34, %v726_v5  ;;  %v762_v9 = vmax.f32 %v724_v2, 0.0 }
 0x2f7   :  { %v765_v8 = vmax.f32 %v735_v4, 0.0 }
 0x2f8   :  { %v763_v10 = vmax.f32 %v727_v6, 0.0 }
 0x2f9   :  { %v961_v11 = vpack.c.bf16 %v765_v8, %v764_v7 }
 0x2fa   :  { %v956_v12 = vpack.c.bf16 %v763_v10, %v762_v9  ;;  %v1122_v13 = vpop.f32.mrb[12].mxu1 }
 0x2fb   :  { %977 = vst [vmem:[%s1346_s8 + $0x28] sm:$0xff] %v961_v11   ;;  %v748_v14 = vadd.f32 %v1122_v13, %v892_v34  ;;  %v739_v15 = vpop.f32.mrb[13].mxu1 }
 0x2fc   :  { %976 = vst [vmem:[%s1346_s8 + $0x20] sm:$0xff] %v956_v12   ;;  %v740_v16 = vadd.f32 %v892_v34, %v739_v15  ;;  %v1123_v17 = vpop.f32.mrb[14].mxu1 }
 0x2fd   :  { %v751_v18 = vadd.f32 %v1123_v17, %v892_v34  ;;  %v742_v19 = vpop.f32.mrb[15].mxu1  ;;  %v768_v21 = vmax.f32 %v748_v14, 0.0 }
 0x2fe   :  { %v743_v20 = vadd.f32 %v892_v34, %v742_v19  ;;  %v766_v23 = vmax.f32 %v740_v16, 0.0 }
 0x2ff   :  { %v769_v22 = vmax.f32 %v751_v18, 0.0 }
 0x300   :  { %v767_v24 = vmax.f32 %v743_v20, 0.0 }
 0x301   :  { %v971_v25 = vpack.c.bf16 %v769_v22, %v768_v21 }
 0x302   :  { %v966_v26 = vpack.c.bf16 %v767_v24, %v766_v23 }
 0x303   :  { %979 = vst [vmem:[%s1346_s8 + $0x38] sm:$0xff] %v971_v25  }
 0x304   :  { %978 = vst [vmem:[%s1346_s8 + $0x30] sm:$0xff] %v966_v26  }

// kernel: gin_forward.3
= control target key start
LH: loop header
LB: loop body
LE: loop exit
PB: predicated region body
PF: predicated region fallthrough
CT: control target
= control target key end

     0   :  { %v1453_v0 = vmov 0.0   ;;  %s1729_s0 = inlined_call_operand.<no memory space> [shape: s32[1,1], index: 0, kind: input, shape index: {}]   ;;  %s1730_s1 = inlined_call_operand.<no memory space> [shape: s32[1], index: 1, kind: input, shape index: {}]   ;;  %s1731_s3 = inlined_call_operand.vmem [shape: bf16[128,128], index: 3, kind: input, shape index: {}]   ;;  %s1732_s4 = inlined_call_operand.vmem [shape: s32[1,128], index: 4, kind: input, shape index: {}]   ;;  %s1733_s5 = inlined_call_operand.vmem [shape: bf16[128,128], index: 5, kind: input, shape index: {}]   ;;  %s1734_s6 = inlined_call_operand.vmem [shape: f32[1,128], index: 6, kind: input, shape index: {}]   ;;  %s1735_s7 = inlined_call_operand.vmem [shape: bf16[128,128], index: 7, kind: input, shape index: {}]   ;;  %s1736_s8 = inlined_call_operand.vmem [shape: f32[1,128], index: 8, kind: input, shape index: {}]   ;;  %s1737_s9 = inlined_call_operand.vmem [shape: bf16[128,128], index: 9, kind: input, shape index: {}]   ;;  %s1738_s10 = inlined_call_operand.vmem [shape: f32[1,128], index: 10, kind: input, shape index: {}]   ;;  %s1739_s11 = inlined_call_operand.vmem [shape: bf16[128,128], index: 11, kind: input, shape index: {}]   ;;  %s1740_s12 = inlined_call_operand.vmem [shape: f32[1,128], index: 12, kind: input, shape index: {}]   ;;  %s1741_s13 = inlined_call_operand.vmem [shape: f32[8,128], index: 13, kind: output, shape index: {}]   ;;  %s1742_s2 = inlined_call_operand.vmem [shape: bf16[128,128], index: 2, kind: input, shape index: {}]  }
   0x1   :  { %18 = sst [smem:[#allocation5]] %s1729_s0  ;;  %p66_p0 = scmp.lt.s32.totalorder %s1729_s0, 0  ;;  %81 = vst [vmem:[#allocation3] sm:$0xff] %v1453_v0  ;;  %85 = vst [vmem:[#allocation2] sm:$0xff] %v1453_v0 }
   0x2   :  { %86 = vst [vmem:[#allocation2 + $0x8] sm:$0xff] %v1453_v0  ;;  %87 = vst [vmem:[#allocation2 + $0x10] sm:$0xff] %v1453_v0  ;;  %p1096_p1 = scmp.le.s32.totalorder %s1730_s1, 0 }
   0x3   :  { %88 = vst [vmem:[#allocation2 + $0x18] sm:$0xff] %v1453_v0  ;;  %89 = vst [vmem:[#allocation2 + $0x20] sm:$0xff] %v1453_v0  ;;  %s1744_s0 = smov (!%p66_p0, %s1729_s0), 0  ;;  %s109_s22 = sld [smem:[#allocation5]] (!%p1096_p1) }
   0x4   :  { %90 = vst [vmem:[#allocation2 + $0x28] sm:$0xff] %v1453_v0  ;;  %91 = vst [vmem:[#allocation2 + $0x30] sm:$0xff] %v1453_v0  ;;  %s1094_s16 = sshll.u32 %s1744_s0, 2  ;;  %105 = sbr.rel (%p1096_p1) target bundleno = 272 (0x110), region = 57 }
   0x5   :  { %92 = vst [vmem:[#allocation2 + $0x38] sm:$0xff] %v1453_v0  ;;  %93 = vst [vmem:[#allocation2 + $0x40] sm:$0xff] %v1453_v0  ;;  %s1559_s19 = scalar_lea.vmem %s1742_s2, %s1094_s16 }
   0x6   :  { %94 = vst [vmem:[#allocation2 + $0x48] sm:$0xff] %v1453_v0  ;;  %95 = vst [vmem:[#allocation2 + $0x50] sm:$0xff] %v1453_v0  ;;  %v1413_v1 = vld [vmem:[%s1559_s19] sm:$0xff] (!%p1096_p1)   ;;  %v1415_v11 = vld [vmem:[%s1559_s19 + $0x8] sm:$0xff] (!%p1096_p1)  }
   0x7   :  { %96 = vst [vmem:[#allocation2 + $0x58] sm:$0xff] %v1453_v0  ;;  %97 = vst [vmem:[#allocation2 + $0x60] sm:$0xff] %v1453_v0  ;;  %v1414_v2 = vld [vmem:[%s1559_s19 + $0x20] sm:$0xff] (!%p1096_p1)   ;;  %1246 = vmatprep.mubr.bf16.mxu0 (!%p1096_p1), %v1413_v1  ;;  %v1416_v12 = vld [vmem:[%s1559_s19 + $0x28] sm:$0xff] (!%p1096_p1)  }
   0x8   :  { %98 = vst [vmem:[#allocation2 + $0x68] sm:$0xff] %v1453_v0  ;;  %99 = vst [vmem:[#allocation2 + $0x70] sm:$0xff] %v1453_v0  ;;  %1254 = vmatprep.mubr.bf16.mxu1 (!%p1096_p1), %v1414_v2  ;;  %v1417_v13 = vld [vmem:[%s1559_s19 + $0x10] sm:$0xff] (!%p1096_p1)   ;;  %v1419_v15 = vld [vmem:[%s1559_s19 + $0x18] sm:$0xff] (!%p1096_p1)  }
   0x9   :  { %100 = vst [vmem:[#allocation2 + $0x78] sm:$0xff] %v1453_v0  ;;  %s1097_s23 = sshll.u32 (!%p1096_p1), %s109_s22, 7  ;;  %v1418_v14 = vld [vmem:[%s1559_s19 + $0x30] sm:$0xff] (!%p1096_p1)   ;;  %v1420_v16 = vld [vmem:[%s1559_s19 + $0x38] sm:$0xff] (!%p1096_p1)   ;;  %v131_v19 = vld [vmem:[#allocation2] sm:$0xff] (!%p1096_p1) }
   0xa   :  { %s111_s24 = sshra.s32 (!%p1096_p1), %s1097_s23, 3  ;;  %v133_v17 = vld [vmem:[#allocation2 + $0x10] sm:$0xff] (!%p1096_p1)  ;;  %v134_v23 = vld [vmem:[#allocation2 + $0x18] sm:$0xff] (!%p1096_p1)  ;;  %v132_v29 = vld [vmem:[#allocation2 + $0x8] sm:$0xff] (!%p1096_p1) }
   0xb   :  { %s1098_s0 = sshll.u32 %s111_s24, 2  ;;  %v137_v41 = vld [vmem:[#allocation2 + $0x30] sm:$0xff]  ;;  %v135_v43 = vld [vmem:[#allocation2 + $0x20] sm:$0xff]  ;;  %v136_v53 = vld [vmem:[#allocation2 + $0x28] sm:$0xff] }
   0xc   :  { %s1569_s2 = scalar_lea.vmem %s1731_s3, %s1098_s0  ;;  %v139_v20 = vld [vmem:[#allocation2 + $0x40] sm:$0xff]  ;;  %v138_v47 = vld [vmem:[#allocation2 + $0x38] sm:$0xff] }
   0xd   :  { %v1405_v3 = vld [vmem:[%s1569_s2] sm:$0xff]   ;;  %v1406_v4 = vld [vmem:[%s1569_s2 + $0x8] sm:$0xff]   ;;  %v1407_v5 = vld [vmem:[%s1569_s2 + $0x10] sm:$0xff]  }
   0xe   :  { %1230 = vmatprep.subr.bf16.mxu0 %v1405_v3  ;;  %1386 = vmatprep.subr.bf16.mxu1 %v1405_v3  ;;  %v1408_v6 = vld [vmem:[%s1569_s2 + $0x18] sm:$0xff]   ;;  %v1409_v7 = vld [vmem:[%s1569_s2 + $0x20] sm:$0xff]   ;;  %v1410_v8 = vld [vmem:[%s1569_s2 + $0x28] sm:$0xff]  }
   0xf   :  { %1231 = vmatpush3.bf16.msra.mxu0 %v1405_v3  ;;  %1394 = vmatpush3.bf16.msra.mxu1 %v1405_v3  ;;  %v1411_v9 = vld [vmem:[%s1569_s2 + $0x30] sm:$0xff]   ;;  %v1412_v10 = vld [vmem:[%s1569_s2 + $0x38] sm:$0xff]   ;;  %v140_v30 = vld [vmem:[#allocation2 + $0x48] sm:$0xff] }
  0x10   :  { %1232 = vmatprep.subr.bf16.mxu0 %v1406_v4  ;;  %1387 = vmatprep.subr.bf16.mxu1 %v1406_v4  ;;  %v141_v18 = vld [vmem:[#allocation2 + $0x50] sm:$0xff]  ;;  %v142_v24 = vld [vmem:[#allocation2 + $0x58] sm:$0xff]  ;;  %v143_v44 = vld [vmem:[#allocation2 + $0x60] sm:$0xff] }
  0x11   :  { %v145_v42 = vld [vmem:[#allocation2 + $0x70] sm:$0xff]  ;;  %v146_v48 = vld [vmem:[#allocation2 + $0x78] sm:$0xff]  ;;  %v144_v54 = vld [vmem:[#allocation2 + $0x68] sm:$0xff] }
  0x13   :  { %1233 = vmatpush3.bf16.msra.mxu0 %v1406_v4  ;;  %1395 = vmatpush3.bf16.msra.mxu1 %v1406_v4 }
  0x14   :  { %1234 = vmatprep.subr.bf16.mxu0 %v1407_v5  ;;  %1388 = vmatprep.subr.bf16.mxu1 %v1407_v5 }
  0x17   :  { %1235 = vmatpush3.bf16.msra.mxu0 %v1407_v5  ;;  %1396 = vmatpush3.bf16.msra.mxu1 %v1407_v5 }
  0x18   :  { %1236 = vmatprep.subr.bf16.mxu0 %v1408_v6  ;;  %1389 = vmatprep.subr.bf16.mxu1 %v1408_v6 }
  0x1b   :  { %1237 = vmatpush3.bf16.msra.mxu0 %v1408_v6  ;;  %1397 = vmatpush3.bf16.msra.mxu1 %v1408_v6 }
  0x1c   :  { %1238 = vmatprep.subr.bf16.mxu0 %v1409_v7  ;;  %1390 = vmatprep.subr.bf16.mxu1 %v1409_v7 }
  0x1f   :  { %1239 = vmatpush3.bf16.msra.mxu0 %v1409_v7  ;;  %1398 = vmatpush3.bf16.msra.mxu1 %v1409_v7 }
  0x20   :  { %1240 = vmatprep.subr.bf16.mxu0 %v1410_v8  ;;  %1391 = vmatprep.subr.bf16.mxu1 %v1410_v8 }
  0x23   :  { %1241 = vmatpush3.bf16.msra.mxu0 %v1410_v8  ;;  %1399 = vmatpush3.bf16.msra.mxu1 %v1410_v8 }
  0x24   :  { %1242 = vmatprep.subr.bf16.mxu0 %v1411_v9  ;;  %1392 = vmatprep.subr.bf16.mxu1 %v1411_v9 }
  0x27   :  { %1243 = vmatpush3.bf16.msra.mxu0 %v1411_v9  ;;  %1400 = vmatpush3.bf16.msra.mxu1 %v1411_v9 }
  0x28   :  { %1244 = vmatprep.subr.bf16.mxu0 %v1412_v10  ;;  %1393 = vmatprep.subr.bf16.mxu1 %v1412_v10 }
  0x2b   :  { %1245 = vmatpush3.bf16.msra.mxu0 %v1412_v10  ;;  %1401 = vmatpush3.bf16.msra.mxu1 %v1412_v10 }
  0x2e   :  { %1247 = vmatmul.mubr.bf16.vlgmr.msra.gmra.mrb[0].mxu0 %v1415_v11  ;;  %1255 = vmatmul.mubr.bf16.vlgmr.msra.gmra.mrb[0].mxu1 %v1416_v12 }
  0x2f   :  { %1250 = vmatprep.mubr.bf16.mxu0 %v1417_v13  ;;  %1258 = vmatprep.mubr.bf16.mxu1 %v1418_v14 }
  0x36   :  { %1251 = vmatmul.mubr.bf16.gmra.mrb[4].mxu0 %v1419_v15  ;;  %1259 = vmatmul.mubr.bf16.gmra.mrb[4].mxu1 %v1420_v16 }
 0x101   :  { %v1248_v21 = vpop.f32.mrb[0].mxu0  ;;  %v1256_v22 = vpop.f32.mrb[0].mxu1 }
 0x102   :  { %v358_v25 = vadd.f32 %v1248_v21, %v133_v17  ;;  %v366_v26 = vadd.f32 %v1256_v22, %v141_v18  ;;  %v293_v27 = vpop.f32.mrb[1].mxu0  ;;  %v325_v28 = vpop.f32.mrb[1].mxu1 }
 0x103   :  { %v356_v31 = vadd.f32 %v293_v27, %v131_v19  ;;  %v364_v32 = vadd.f32 %v325_v28, %v139_v20  ;;  %v1249_v33 = vpop.f32.mrb[2].mxu0  ;;  %v1257_v34 = vpop.f32.mrb[2].mxu1 }
 0x104   :  { %374 = vst [vmem:[#allocation2 + $0x10] sm:$0xff] %v358_v25  ;;  %382 = vst [vmem:[#allocation2 + $0x50] sm:$0xff] %v366_v26  ;;  %v359_v35 = vadd.f32 %v1249_v33, %v134_v23  ;;  %v367_v36 = vadd.f32 %v1257_v34, %v142_v24  ;;  %v296_v37 = vpop.f32.mrb[3].mxu0  ;;  %v328_v38 = vpop.f32.mrb[3].mxu1 }
 0x105   :  { %372 = vst [vmem:[#allocation2] sm:$0xff] %v356_v31  ;;  %380 = vst [vmem:[#allocation2 + $0x40] sm:$0xff] %v364_v32  ;;  %v357_v39 = vadd.f32 %v296_v37, %v132_v29  ;;  %v365_v40 = vadd.f32 %v328_v38, %v140_v30 }
 0x106   :  { %375 = vst [vmem:[#allocation2 + $0x18] sm:$0xff] %v359_v35  ;;  %383 = vst [vmem:[#allocation2 + $0x58] sm:$0xff] %v367_v36 }
 0x107   :  { %373 = vst [vmem:[#allocation2 + $0x8] sm:$0xff] %v357_v39  ;;  %381 = vst [vmem:[#allocation2 + $0x48] sm:$0xff] %v365_v40 }
 0x109   :  { %v1252_v45 = vpop.f32.mrb[4].mxu0  ;;  %v1260_v46 = vpop.f32.mrb[4].mxu1 }
 0x10a   :  { %v362_v49 = vadd.f32 %v1252_v45, %v137_v41  ;;  %v370_v50 = vadd.f32 %v1260_v46, %v145_v42  ;;  %v309_v51 = vpop.f32.mrb[5].mxu0  ;;  %v341_v52 = vpop.f32.mrb[5].mxu1 }
 0x10b   :  { %v360_v55 = vadd.f32 %v309_v51, %v135_v43  ;;  %v368_v56 = vadd.f32 %v341_v52, %v143_v44  ;;  %v1253_v57 = vpop.f32.mrb[6].mxu0  ;;  %v1261_v58 = vpop.f32.mrb[6].mxu1 }
 0x10c   :  { %378 = vst [vmem:[#allocation2 + $0x30] sm:$0xff] %v362_v49  ;;  %386 = vst [vmem:[#allocation2 + $0x70] sm:$0xff] %v370_v50  ;;  %v363_v59 = vadd.f32 %v1253_v57, %v138_v47  ;;  %v371_v60 = vadd.f32 %v1261_v58, %v146_v48  ;;  %v312_v61 = vpop.f32.mrb[7].mxu0  ;;  %v344_v62 = vpop.f32.mrb[7].mxu1 }
 0x10d   :  { %376 = vst [vmem:[#allocation2 + $0x20] sm:$0xff] %v360_v55  ;;  %384 = vst [vmem:[#allocation2 + $0x60] sm:$0xff] %v368_v56  ;;  %v361_v63 = vadd.f32 %v312_v61, %v136_v53  ;;  %v369_v1 = vadd.f32 %v344_v62, %v144_v54 }
 0x10e   :  { %379 = vst [vmem:[#allocation2 + $0x38] sm:$0xff] %v363_v59  ;;  %387 = vst [vmem:[#allocation2 + $0x78] sm:$0xff] %v371_v60 }
 0x10f   :  { %377 = vst [vmem:[#allocation2 + $0x28] sm:$0xff] %v361_v63  ;;  %385 = vst [vmem:[#allocation2 + $0x68] sm:$0xff] %v369_v1 }
 0x110 PF:  { %v1421_v2 = vld [vmem:[%s1733_s5] sm:$0xff]   ;;  %v1422_v3 = vld [vmem:[%s1733_s5 + $0x8] sm:$0xff]   ;;  %v1423_v4 = vld [vmem:[%s1733_s5 + $0x10] sm:$0xff]   ;;  %vm1454_vm0 = vmmov 0  }
 0x111   :  { %1262 = vmatprep.subr.bf16.mxu0 %v1421_v2  ;;  %v1424_v5 = vld [vmem:[%s1733_s5 + $0x18] sm:$0xff]   ;;  %v391_v6 = vld [vmem:[#allocation2] sm:$0xff]  ;;  %v392_v7 = vld [vmem:[#allocation2 + $0x8] sm:$0xff] }
 0x112   :  { %1263 = vmatpush3.bf16.msra.mxu0 %v1421_v2  ;;  %v407_v8 = vpack.c.bf16 %v392_v7, %v391_v6  ;;  %v1425_v9 = vld [vmem:[%s1733_s5 + $0x20] sm:$0xff]   ;;  %v1430_v11 = vld [vmem:[%s1735_s7 + $0x8] sm:$0xff]   ;;  %v1431_v13 = vld [vmem:[%s1735_s7 + $0x10] sm:$0xff]  }
 0x113   :  { %1264 = vmatprep.subr.bf16.mxu0 %v1422_v3  ;;  %v1429_v10 = vld [vmem:[%s1735_s7] sm:$0xff]   ;;  %v1426_v12 = vld [vmem:[%s1733_s5 + $0x28] sm:$0xff]   ;;  %v1427_v14 = vld [vmem:[%s1733_s5 + $0x30] sm:$0xff]  }
 0x114   :  { %1278 = vmatprep.mubr.bf16.mxu0 %v407_v8  ;;  %1294 = vmatprep.subr.bf16.mxu1 %v1429_v10  ;;  %v1432_v15 = vld [vmem:[%s1735_s7 + $0x18] sm:$0xff]   ;;  %v1433_v17 = vld [vmem:[%s1735_s7 + $0x20] sm:$0xff]   ;;  %v393_v18 = vld [vmem:[#allocation2 + $0x10] sm:$0xff] }
 0x115   :  { %1295 = vmatpush3.bf16.msra.mxu1 %v1429_v10  ;;  %v1428_v16 = vld [vmem:[%s1733_s5 + $0x38] sm:$0xff]   ;;  %v395_v20 = vld [vmem:[#allocation2 + $0x20] sm:$0xff]  ;;  %v1434_v22 = vld [vmem:[%s1735_s7 + $0x28] sm:$0xff]  }
 0x116   :  { %1265 = vmatpush3.bf16.msra.mxu0 %v1422_v3  ;;  %1296 = vmatprep.subr.bf16.mxu1 %v1430_v11  ;;  %v394_v19 = vld [vmem:[#allocation2 + $0x18] sm:$0xff]  ;;  %v396_v21 = vld [vmem:[#allocation2 + $0x28] sm:$0xff]  ;;  %v397_v25 = vld [vmem:[#allocation2 + $0x30] sm:$0xff] }
 0x117   :  { %1266 = vmatprep.subr.bf16.mxu0 %v1423_v4  ;;  %v408_v23 = vpack.c.bf16 %v394_v19, %v393_v18  ;;  %v409_v24 = vpack.c.bf16 %v396_v21, %v395_v20  ;;  %v398_v26 = vld [vmem:[#allocation2 + $0x38] sm:$0xff]  ;;  %v399_v27 = vld [vmem:[#allocation2 + $0x40] sm:$0xff]  ;;  %v400_v28 = vld [vmem:[#allocation2 + $0x48] sm:$0xff] }
 0x118   :  { %v410_v29 = vpack.c.bf16 %v398_v26, %v397_v25  ;;  %v411_v30 = vpack.c.bf16 %v400_v28, %v399_v27  ;;  %v401_v31 = vld [vmem:[#allocation2 + $0x50] sm:$0xff]  ;;  %v402_v32 = vld [vmem:[#allocation2 + $0x58] sm:$0xff]  ;;  %v403_v33 = vld [vmem:[#allocation2 + $0x60] sm:$0xff] }
 0x119   :  { %1297 = vmatpush3.bf16.msra.mxu1 %v1430_v11  ;;  %v404_v34 = vld [vmem:[#allocation2 + $0x68] sm:$0xff]  ;;  %v412_v35 = vpack.c.bf16 %v402_v32, %v401_v31  ;;  %v405_v37 = vld [vmem:[#allocation2 + $0x70] sm:$0xff]  ;;  %v406_v38 = vld [vmem:[#allocation2 + $0x78] sm:$0xff] }
 0x11a   :  { %1267 = vmatpush3.bf16.msra.mxu0 %v1423_v4  ;;  %1298 = vmatprep.subr.bf16.mxu1 %v1431_v13  ;;  %v413_v36 = vpack.c.bf16 %v404_v34, %v403_v33  ;;  %v414_v39 = vpack.c.bf16 %v406_v38, %v405_v37  ;;  %v1435_v40 = vld [vmem:[%s1735_s7 + $0x30] sm:$0xff]   ;;  %v1436_v41 = vld [vmem:[%s1735_s7 + $0x38] sm:$0xff]   ;;  %v1115_v42 = vld [vmem:[%s1734_s6] ss:$0 sm:$0xff] }
 0x11b   :  { %1268 = vmatprep.subr.bf16.mxu0 %v1424_v5  ;;  %v1438_v37 = vld [vmem:[%s1737_s9 + $0x8] sm:$0xff]   ;;  %v1439_v38 = vld [vmem:[%s1737_s9 + $0x10] sm:$0xff]  }
 0x11d   :  { %1299 = vmatpush3.bf16.msra.mxu1 %v1431_v13 }
 0x11e   :  { %1269 = vmatpush3.bf16.msra.mxu0 %v1424_v5  ;;  %1300 = vmatprep.subr.bf16.mxu1 %v1432_v15 }
 0x11f   :  { %1270 = vmatprep.subr.bf16.mxu0 %v1425_v9 }
 0x121   :  { %1301 = vmatpush3.bf16.msra.mxu1 %v1432_v15 }
 0x122   :  { %1271 = vmatpush3.bf16.msra.mxu0 %v1425_v9  ;;  %1302 = vmatprep.subr.bf16.mxu1 %v1433_v17 }
 0x123   :  { %1272 = vmatprep.subr.bf16.mxu0 %v1426_v12 }
 0x125   :  { %1303 = vmatpush3.bf16.msra.mxu1 %v1433_v17 }
 0x126   :  { %1273 = vmatpush3.bf16.msra.mxu0 %v1426_v12  ;;  %1304 = vmatprep.subr.bf16.mxu1 %v1434_v22 }
 0x127   :  { %1274 = vmatprep.subr.bf16.mxu0 %v1427_v14 }
 0x129   :  { %1305 = vmatpush3.bf16.msra.mxu1 %v1434_v22 }
 0x12a   :  { %1275 = vmatpush3.bf16.msra.mxu0 %v1427_v14  ;;  %1306 = vmatprep.subr.bf16.mxu1 %v1435_v40 }
 0x12b   :  { %1276 = vmatprep.subr.bf16.mxu0 %v1428_v16 }
 0x12d   :  { %1307 = vmatpush3.bf16.msra.mxu1 %v1435_v40  ;;  %v1441_v40 = vld [vmem:[%s1737_s9 + $0x20] sm:$0xff]  }
 0x12e   :  { %1277 = vmatpush3.bf16.msra.mxu0 %v1428_v16  ;;  %1308 = vmatprep.subr.bf16.mxu1 %v1436_v41 }
 0x12f   :  { %1326 = vmatprep.subr.bf16.mxu0 %v1453_v0 }
 0x131   :  { %1279 = vmatmul.mubr.bf16.vlgmr.msra.gmra.mrb[0].mxu0 %v408_v23  ;;  %1309 = vmatpush3.bf16.msra.mxu1 %v1436_v41  ;;  %v1124_v41 = vld [vmem:[%s1736_s8] ss:$0 sm:$0xff] }
 0x132   :  { %1282 = vmatprep.mubr.bf16.mxu0 %v409_v24  ;;  %1346 = vmatprep.subr.bf16.mxu1 %v1453_v0 }
 0x139   :  { %1283 = vmatmul.mubr.bf16.gmra.mrb[4].mxu0 %v410_v29 }
 0x13a   :  { %1286 = vmatprep.mubr.bf16.mxu0 %v411_v30 }
 0x141   :  { %1287 = vmatmul.mubr.bf16.gmra.mrb[8].mxu0 %v412_v35 }
 0x142   :  { %1290 = vmatprep.mubr.bf16.mxu0 %v413_v36  ;;  %v1437_v36 = vld [vmem:[%s1737_s9] sm:$0xff]  }
 0x149   :  { %1291 = vmatmul.mubr.bf16.gmra.mrb[12].mxu0 %v414_v39  ;;  %v1440_v39 = vld [vmem:[%s1737_s9 + $0x18] sm:$0xff]  }
 0x14a   :  { %1342 = vmatprep.mubr.msk.bf16.mxu0 %vm1454_vm0, %v1453_v0 }
 0x204   :  { %v1280_v43 = vpop.f32.mrb[0].mxu0 }
 0x205   :  { %v529_v44 = vadd.f32 %v1280_v43, %v1115_v42  ;;  %v520_v45 = vpop.f32.mrb[1].mxu0 }
 0x206   :  { %v521_v46 = vadd.f32 %v1115_v42, %v520_v45  ;;  %v1281_v47 = vpop.f32.mrb[2].mxu0 }
 0x207   :  { %v532_v48 = vadd.f32 %v1281_v47, %v1115_v42  ;;  %v523_v49 = vpop.f32.mrb[3].mxu0  ;;  %v585_v51 = vmax.f32 %v529_v44, 0.0 }
 0x208   :  { %v524_v50 = vadd.f32 %v1115_v42, %v523_v49  ;;  %v583_v53 = vmax.f32 %v521_v46, 0.0 }
 0x209   :  { %v586_v52 = vmax.f32 %v532_v48, 0.0 }
 0x20a   :  { %v584_v54 = vmax.f32 %v524_v50, 0.0 }
 0x20b   :  { %v600_v55 = vpack.c.bf16 %v586_v52, %v585_v51 }
 0x20c   :  { %v1284_v56 = vpop.f32.mrb[4].mxu0  ;;  %v599_v57 = vpack.c.bf16 %v584_v54, %v583_v53 }
 0x20d   :  { %v545_v58 = vadd.f32 %v1284_v56, %v1115_v42  ;;  %v536_v59 = vpop.f32.mrb[5].mxu0 }
 0x20e   :  { %v537_v60 = vadd.f32 %v1115_v42, %v536_v59  ;;  %v1285_v61 = vpop.f32.mrb[6].mxu0  ;;  %1310 = vmatprep.mubr.bf16.mxu1 %v599_v57 }
 0x20f   :  { %v548_v62 = vadd.f32 %v1285_v61, %v1115_v42  ;;  %v539_v63 = vpop.f32.mrb[7].mxu0  ;;  %1311 = vmatmul.mubr.bf16.vlgmr.msra.gmra.mrb[0].mxu1 %v600_v55  ;;  %v589_v2 = vmax.f32 %v545_v58, 0.0 }
 0x210   :  { %v540_v1 = vadd.f32 %v1115_v42, %v539_v63  ;;  %v587_v4 = vmax.f32 %v537_v60, 0.0  ;;  %1347 = vmatpush3.bf16.msra.mxu1 %v1437_v36 }
 0x211   :  { %v590_v3 = vmax.f32 %v548_v62, 0.0  ;;  %1348 = vmatprep.subr.bf16.mxu1 %v1453_v0 }
 0x212   :  { %v588_v5 = vmax.f32 %v540_v1, 0.0 }
 0x213   :  { %v602_v6 = vpack.c.bf16 %v590_v3, %v589_v2 }
 0x214   :  { %v601_v7 = vpack.c.bf16 %v588_v5, %v587_v4  ;;  %v1288_v8 = vpop.f32.mrb[8].mxu0  ;;  %1349 = vmatpush3.bf16.msra.mxu1 %v1438_v37  ;;  %v1133_v37 = vld [vmem:[%s1732_s4] ss:$0 sm:$0xff] }
 0x215   :  { %v561_v9 = vadd.f32 %v1288_v8, %v1115_v42  ;;  %v552_v10 = vpop.f32.mrb[9].mxu0  ;;  %1350 = vmatprep.subr.bf16.mxu1 %v1453_v0 }
 0x216   :  { %v553_v11 = vadd.f32 %v1115_v42, %v552_v10  ;;  %v1289_v12 = vpop.f32.mrb[10].mxu0  ;;  %1314 = vmatprep.mubr.bf16.mxu1 %v601_v7 }
 0x217   :  { %v564_v13 = vadd.f32 %v1289_v12, %v1115_v42  ;;  %v555_v14 = vpop.f32.mrb[11].mxu0  ;;  %1315 = vmatmul.mubr.bf16.gmra.mrb[4].mxu1 %v602_v6  ;;  %v593_v16 = vmax.f32 %v561_v9, 0.0 }
 0x218   :  { %v556_v15 = vadd.f32 %v1115_v42, %v555_v14  ;;  %v591_v18 = vmax.f32 %v553_v11, 0.0  ;;  %1351 = vmatpush3.bf16.msra.mxu1 %v1439_v38  ;;  %v1455_v38 = vmov 1.0|1.0  }
 0x219   :  { %v594_v17 = vmax.f32 %v564_v13, 0.0  ;;  %1352 = vmatprep.subr.bf16.mxu1 %v1453_v0 }
 0x21a   :  { %v592_v19 = vmax.f32 %v556_v15, 0.0 }
 0x21b   :  { %v604_v20 = vpack.c.bf16 %v594_v17, %v593_v16 }
 0x21c   :  { %v603_v21 = vpack.c.bf16 %v592_v19, %v591_v18  ;;  %v1292_v22 = vpop.f32.mrb[12].mxu0  ;;  %1353 = vmatpush3.bf16.msra.mxu1 %v1440_v39  ;;  %v1442_v39 = vld [vmem:[%s1737_s9 + $0x28] sm:$0xff]  }
 0x21d   :  { %v577_v23 = vadd.f32 %v1292_v22, %v1115_v42  ;;  %v568_v24 = vpop.f32.mrb[13].mxu0  ;;  %1354 = vmatprep.subr.bf16.mxu1 %v1453_v0 }
 0x21e   :  { %v569_v25 = vadd.f32 %v1115_v42, %v568_v24  ;;  %v1293_v26 = vpop.f32.mrb[14].mxu0  ;;  %1318 = vmatprep.mubr.bf16.mxu1 %v603_v21 }
 0x21f   :  { %v580_v27 = vadd.f32 %v1293_v26, %v1115_v42  ;;  %v571_v28 = vpop.f32.mrb[15].mxu0  ;;  %1319 = vmatmul.mubr.bf16.gmra.mrb[8].mxu1 %v604_v20  ;;  %v597_v30 = vmax.f32 %v577_v23, 0.0 }
 0x220   :  { %v572_v29 = vadd.f32 %v1115_v42, %v571_v28  ;;  %v595_v32 = vmax.f32 %v569_v25, 0.0  ;;  %1355 = vmatpush3.bf16.msra.mxu1 %v1441_v40  ;;  %v791_v28 = vlaneseq  ;;  %v1443_v40 = vld [vmem:[%s1737_s9 + $0x30] sm:$0xff]  }
 0x221   :  { %v598_v31 = vmax.f32 %v580_v27, 0.0  ;;  %1356 = vmatprep.subr.bf16.mxu1 %v1453_v0 }
 0x222   :  { %v596_v33 = vmax.f32 %v572_v29, 0.0 }
 0x223   :  { %v606_v34 = vpack.c.bf16 %v598_v31, %v597_v30 }
 0x224   :  { %v605_v35 = vpack.c.bf16 %v596_v33, %v595_v32  ;;  %1357 = vmatpush3.bf16.msra.mxu1 %v1442_v39 }
 0x225   :  { %1358 = vmatprep.subr.bf16.mxu1 %v1453_v0 }
 0x226   :  { %1322 = vmatprep.mubr.bf16.mxu1 %v605_v35  ;;  %v792_v35 = vshrl.u32 %v791_v28, 7 }
 0x227   :  { %1323 = vmatmul.mubr.bf16.gmra.mrb[12].mxu1 %v606_v34 }
 0x228   :  { %1362 = vmatprep.mubr.msk.bf16.mxu1 %vm1454_vm0, %v1453_v0  ;;  %vm798_vm1 = vcmp.eq.s32.totalorder %v1133_v37, %v792_v35  ;;  %1359 = vmatpush3.bf16.msra.mxu1 %v1443_v40 }
 0x229   :  { %vm1135_vm2 = vmpackc.low %vm798_vm1, %vm798_vm1  ;;  %1360 = vmatprep.subr.bf16.mxu1 %v1453_v0 }
 0x2e2   :  { %v1312_v42 = vpop.f32.mrb[0].mxu1 }
 0x2e3   :  { %v721_v43 = vadd.f32 %v1312_v42, %v1124_v41  ;;  %v712_v44 = vpop.f32.mrb[1].mxu1  ;;  %v1445_v42 = vld [vmem:[%s1739_s11] sm:$0xff]  }
 0x2e4   :  { %v713_v45 = vadd.f32 %v1124_v41, %v712_v44  ;;  %v1313_v46 = vpop.f32.mrb[2].mxu1  ;;  %v1447_v44 = vld [vmem:[%s1739_s11 + $0x10] sm:$0xff]  }
 0x2e5   :  { %v724_v47 = vadd.f32 %v1313_v46, %v1124_v41  ;;  %v715_v48 = vpop.f32.mrb[3].mxu1  ;;  %v777_v50 = vmax.f32 %v721_v43, 0.0  ;;  %v1446_v43 = vld [vmem:[%s1739_s11 + $0x8] sm:$0xff]   ;;  %v1449_v46 = vld [vmem:[%s1739_s11 + $0x20] sm:$0xff]  }
 0x2e6   :  { %v716_v49 = vadd.f32 %v1124_v41, %v715_v48  ;;  %v775_v52 = vmax.f32 %v713_v45, 0.0  ;;  %v1448_v45 = vld [vmem:[%s1739_s11 + $0x18] sm:$0xff]   ;;  %v802_v48 = vld [vmem:[#allocation3] sm:$0xff] }
 0x2e7   :  { %v778_v51 = vmax.f32 %v724_v47, 0.0  ;;  %v1450_v47 = vld [vmem:[%s1739_s11 + $0x28] sm:$0xff]  }
 0x2e8   :  { %v776_v53 = vmax.f32 %v716_v49, 0.0 }
 0x2e9   :  { %v804_v54 = vpack.c.bf16 %v778_v51, %v777_v50 }
 0x2ea   :  { %v803_v55 = vpack.c.bf16 %v776_v53, %v775_v52  ;;  %v1316_v56 = vpop.f32.mrb[4].mxu1 }
 0x2eb   :  { %v737_v57 = vadd.f32 %v1316_v56, %v1124_v41  ;;  %v728_v58 = vpop.f32.mrb[5].mxu1  ;;  %v1452_v56 = vld [vmem:[%s1739_s11 + $0x38] sm:$0xff]  }
 0x2ec   :  { %v729_v59 = vadd.f32 %v1124_v41, %v728_v58  ;;  %v1317_v60 = vpop.f32.mrb[6].mxu1  ;;  %1327 = vmatpush3.bf16.msra.mxu0 %v803_v55  ;;  %v1451_v55 = vld [vmem:[%s1739_s11 + $0x30] sm:$0xff]  }
 0x2ed   :  { %v740_v61 = vadd.f32 %v1317_v60, %v1124_v41  ;;  %v731_v62 = vpop.f32.mrb[7].mxu1  ;;  %1328 = vmatprep.subr.bf16.mxu0 %v1453_v0  ;;  %v781_v1 = vmax.f32 %v737_v57, 0.0  ;;  %v1137_v57 = vld [vmem:[%s1738_s10] ss:$0 sm:$0xff] }
 0x2ee   :  { %v732_v63 = vadd.f32 %v1124_v41, %v731_v62  ;;  %v779_v3 = vmax.f32 %v729_v59, 0.0 }
 0x2ef   :  { %v782_v2 = vmax.f32 %v740_v61, 0.0 }
 0x2f0   :  { %v780_v4 = vmax.f32 %v732_v63, 0.0  ;;  %1329 = vmatpush3.bf16.msra.mxu0 %v804_v54 }
 0x2f1   :  { %v806_v5 = vpack.c.bf16 %v782_v2, %v781_v1  ;;  %1330 = vmatprep.subr.bf16.mxu0 %v1453_v0 }
 0x2f2   :  { %v805_v6 = vpack.c.bf16 %v780_v4, %v779_v3  ;;  %v1320_v7 = vpop.f32.mrb[8].mxu1 }
 0x2f3   :  { %v753_v8 = vadd.f32 %v1320_v7, %v1124_v41  ;;  %v744_v9 = vpop.f32.mrb[9].mxu1 }
 0x2f4   :  { %v745_v10 = vadd.f32 %v1124_v41, %v744_v9  ;;  %v1321_v11 = vpop.f32.mrb[10].mxu1  ;;  %1331 = vmatpush3.bf16.msra.mxu0 %v805_v6 }
 0x2f5   :  { %v756_v12 = vadd.f32 %v1321_v11, %v1124_v41  ;;  %v747_v13 = vpop.f32.mrb[11].mxu1  ;;  %1332 = vmatprep.subr.bf16.mxu0 %v1453_v0  ;;  %v785_v15 = vmax.f32 %v753_v8, 0.0 }
 0x2f6   :  { %v748_v14 = vadd.f32 %v1124_v41, %v747_v13  ;;  %v783_v17 = vmax.f32 %v745_v10, 0.0 }
 0x2f7   :  { %v786_v16 = vmax.f32 %v756_v12, 0.0 }
 0x2f8   :  { %v784_v18 = vmax.f32 %v748_v14, 0.0  ;;  %1333 = vmatpush3.bf16.msra.mxu0 %v806_v5 }
 0x2f9   :  { %v808_v19 = vpack.c.bf16 %v786_v16, %v785_v15  ;;  %1334 = vmatprep.subr.bf16.mxu0 %v1453_v0 }
 0x2fa   :  { %v807_v20 = vpack.c.bf16 %v784_v18, %v783_v17  ;;  %v1324_v21 = vpop.f32.mrb[12].mxu1 }
 0x2fb   :  { %v769_v22 = vadd.f32 %v1324_v21, %v1124_v41  ;;  %v760_v23 = vpop.f32.mrb[13].mxu1 }
 0x2fc   :  { %v761_v24 = vadd.f32 %v1124_v41, %v760_v23  ;;  %v1325_v25 = vpop.f32.mrb[14].mxu1  ;;  %1335 = vmatpush3.bf16.msra.mxu0 %v807_v20 }
 0x2fd   :  { %v772_v26 = vadd.f32 %v1325_v25, %v1124_v41  ;;  %v763_v27 = vpop.f32.mrb[15].mxu1  ;;  %1336 = vmatprep.subr.bf16.mxu0 %v1453_v0  ;;  %v789_v30 = vmax.f32 %v769_v22, 0.0 }
 0x2fe   :  { %v764_v29 = vadd.f32 %v1124_v41, %v763_v27  ;;  %v787_v32 = vmax.f32 %v761_v24, 0.0  ;;  %v1444_v41 = vld [vmem:[%s1737_s9 + $0x38] sm:$0xff]  }
 0x2ff   :  { %v790_v31 = vmax.f32 %v772_v26, 0.0  ;;  %1361 = vmatpush3.bf16.msra.mxu1 %v1444_v41 }
 0x300   :  { %v788_v33 = vmax.f32 %v764_v29, 0.0  ;;  %1337 = vmatpush3.bf16.msra.mxu0 %v808_v19 }
 0x301   :  { %v810_v34 = vpack.c.bf16 %v790_v31, %v789_v30  ;;  %1338 = vmatprep.subr.bf16.mxu0 %v1453_v0 }
 0x302   :  { %v809_v36 = vpack.c.bf16 %v788_v33, %v787_v32 }
 0x304   :  { %1339 = vmatpush3.bf16.msra.mxu0 %v809_v36 }
 0x305   :  { %1340 = vmatprep.subr.bf16.mxu0 %v1453_v0 }
 0x308   :  { %1341 = vmatpush3.bf16.msra.mxu0 %v810_v34 }
 0x309   :  { %1366 = vmatprep.subr.bf16.mxu0 %v1453_v0 }
 0x30b   :  { %1343 = vmatmul.mubr.msk.bf16.vlgmr.msra.gmra.mrb[16].mxu0 %vm1135_vm2, %v1455_v38 }
 0x30c   :  { %1382 = vmatprep.mubr.msk.bf16.mxu0 %vm1454_vm0, %v1453_v0  ;;  %1367 = vmatpush3.bf16.msra.mxu0 %v1445_v42 }
 0x30d   :  { %1368 = vmatprep.subr.bf16.mxu0 %v1453_v0 }
 0x310   :  { %1369 = vmatpush3.bf16.msra.mxu0 %v1446_v43 }
 0x311   :  { %1370 = vmatprep.subr.bf16.mxu0 %v1453_v0 }
 0x314   :  { %1371 = vmatpush3.bf16.msra.mxu0 %v1447_v44 }
 0x315   :  { %1372 = vmatprep.subr.bf16.mxu0 %v1453_v0 }
 0x318   :  { %1373 = vmatpush3.bf16.msra.mxu0 %v1448_v45 }
 0x319   :  { %1374 = vmatprep.subr.bf16.mxu0 %v1453_v0 }
 0x31c   :  { %1375 = vmatpush3.bf16.msra.mxu0 %v1449_v46 }
 0x31d   :  { %1376 = vmatprep.subr.bf16.mxu0 %v1453_v0 }
 0x320   :  { %1377 = vmatpush3.bf16.msra.mxu0 %v1450_v47 }
 0x321   :  { %1378 = vmatprep.subr.bf16.mxu0 %v1453_v0 }
 0x324   :  { %1379 = vmatpush3.bf16.msra.mxu0 %v1451_v55 }
 0x325   :  { %1380 = vmatprep.subr.bf16.mxu0 %v1453_v0  ;;  %v1146_v0 = vld [vmem:[%s1740_s12] ss:$0 sm:$0xff] }
 0x328   :  { %1381 = vmatpush3.bf16.msra.mxu0 %v1452_v56 }
 0x3de   :  { %v845_v49 = vpop.f32.mrb[16].mxu0 }
 0x3df   :  { %v851_v50 = vadd.f32 %v845_v49, %v802_v48  ;;  %v1344_v51 = vpop.f32.mrb[17].mxu0 }
 0x3e0   :  { %v848_v52 = vpop.f32.mrb[18].mxu0 }
 0x3e1   :  { %852 = vst [vmem:[#allocation3] sm:$0xff] %v851_v50  ;;  %v1345_v53 = vpop.f32.mrb[19].mxu0  ;;  %v856_v54 = vpack.c.bf16 %v851_v50, %v851_v50 }
 0x3e3   :  { %1363 = vmatmul.mubr.bf16.vlgmr.msra.gmra.mrb[16].mxu1 %v856_v54 }
 0x4b6   :  { %v962_v58 = vpop.f32.mrb[16].mxu1 }
 0x4b7   :  { %v963_v59 = vadd.f32 %v1137_v57, %v962_v58  ;;  %v1364_v60 = vpop.f32.mrb[17].mxu1 }
 0x4b8   :  { %v965_v61 = vpop.f32.mrb[18].mxu1 }
 0x4b9   :  { %v968_v62 = vmax.f32 %v963_v59, 0.0  ;;  %v1365_v63 = vpop.f32.mrb[19].mxu1 }
 0x4bb   :  { %v969_v1 = vpack.c.bf16 %v968_v62, %v968_v62 }
 0x4bd   :  { %1383 = vmatmul.mubr.bf16.vlgmr.msra.gmra.mrb[20].mxu0 %v969_v1 }
 0x590   :  { %v1075_v2 = vpop.f32.mrb[20].mxu0 }
 0x591   :  { %v1076_v3 = vadd.f32 %v1146_v0, %v1075_v2  ;;  %v1384_v4 = vpop.f32.mrb[21].mxu0 }
 0x592   :  { %v1078_v5 = vpop.f32.mrb[22].mxu0 }
 0x593   :  { %1081 = vst [vmem:[%s1741_s13] sm:$0xff] %v1076_v3  ;;  %v1385_v6 = vpop.f32.mrb[23].mxu0 }

</bundles_post_ra>
